<compile_context>
chip_gen: v7x
topology: tpu7x:2x2x1
jax: 0.10.0
libtpu: 0.0.40
codegen_flags: <defaults>
</compile_context>

<pallas_src>
import math
import functools

import jax
import jax.numpy as jnp
from jax.experimental import pallas as pl
from jax.experimental.pallas import tpu as pltpu

# ---- model configuration ----------------------------------------------------
ACTION_DIMS = 6
EMBED_DIM = 32      # module default 10 with nheads=6 is not divisible; use 32/4
NHEADS = 4
HIDDEN_DIMS = 64
NLAYERS = 2
MAX_LEN = 40
LN_EPS = 1e-5
HEAD_PAD = 128      # lane-dense packed (mu | logstd | zeros) output width


# ----------------------------- fused Pallas kernel ---------------------------

def _fused_forward_kernel(act_ref, pos_ref, embw_ref, embb_ref,
                          wqkv_ref, bqkv_ref, wo_ref, bo_ref,
                          ln1g_ref, ln1b_ref, w1_ref, b1_ref,
                          w2_ref, b2_ref, ln2g_ref, ln2b_ref,
                          whead_ref, bhead_ref,
                          o_ref,
                          attn_ref,
                          *, seq_len, nlayers, nheads):
    E = EMBED_DIM
    A = ACTION_DIMS
    dh = E // nheads
    scale = 1.0 / math.sqrt(dh)

    # ---- embedding (sqrt(E) scale folded into weights) + positional encoding
    acts = act_ref[0]                                               # [S, A]
    x = jnp.dot(acts, embw_ref[...], preferred_element_type=jnp.float32)
    x = x + embb_ref[...] + pos_ref[...]                            # [S, E]

    def layer_norm(z, g, b):
        mean = jnp.mean(z, axis=-1, keepdims=True)
        var = jnp.mean(jnp.square(z - mean), axis=-1, keepdims=True)
        return (z - mean) * jax.lax.rsqrt(var + LN_EPS) * g + b

    # ---- encoder layers (unrolled; weights are static-indexed per layer) ----
    for li in range(nlayers):
        # fused QKV projection: one [E, 3E] matmul
        qkv = jnp.dot(x, wqkv_ref[li],
                      preferred_element_type=jnp.float32) + bqkv_ref[li]
        q = qkv[:, 0 * E:1 * E]
        k = qkv[:, 1 * E:2 * E]
        v = qkv[:, 2 * E:3 * E]

        # per-head attention with static lane slices; assemble in VMEM scratch
        for h in range(nheads):
            lo, hi = h * dh, (h + 1) * dh
            qh, kh, vh = q[:, lo:hi], k[:, lo:hi], v[:, lo:hi]      # [S, dh]
            s = jax.lax.dot_general(
                qh, kh, (((1,), (1,)), ((), ())),
                preferred_element_type=jnp.float32) * scale          # [S, S]
            m = jnp.max(s, axis=-1, keepdims=True)
            p = jnp.exp(s - m)
            denom = jnp.sum(p, axis=-1, keepdims=True)
            p = p * pl.reciprocal(denom, approx=True)                # EUP slot
            attn_ref[:, lo:hi] = jnp.dot(p, vh,
                                         preferred_element_type=jnp.float32)

        o = jnp.dot(attn_ref[...], wo_ref[li],
                    preferred_element_type=jnp.float32) + bo_ref[li]
        # TODO(synk): dropout inside TransformerEncoderLayer is identity here (eval semantics).
        x = layer_norm(x + o, ln1g_ref[li], ln1b_ref[li])

        ff = jnp.dot(x, w1_ref[li],
                     preferred_element_type=jnp.float32) + b1_ref[li]
        ff = jnp.maximum(ff, 0.0)
        ff = jnp.dot(ff, w2_ref[li],
                     preferred_element_type=jnp.float32) + b2_ref[li]
        x = layer_norm(x + ff, ln2g_ref[li], ln2b_ref[li])

    # ---- fused mu/logstd heads, only for the last sequence position ---------
    x_last = x[seq_len - 1:seq_len, :]                               # [1, E]
    head = jnp.dot(x_last, whead_ref[...],
                   preferred_element_type=jnp.float32) + bhead_ref[...]  # [1, 128]
    col = jax.lax.broadcasted_iota(jnp.int32, head.shape, 1)
    is_logstd = (col >= A) & (col < 2 * A)
    out = jnp.where(is_logstd, jnp.exp(head), head)   # std = exp(logstd), in-kernel
    o_ref[...] = out.reshape(1, 1, HEAD_PAD)          # lane-dense 128-wide store


def _const_spec(shape):
    zeros = (0,) * len(shape)
    return pl.BlockSpec(shape, lambda b: zeros)


# --------------------------- parameter init (glue) ---------------------------

def _dense_init(key, fan_in, fan_out):
    k1, k2 = jax.random.split(key)
    lim = 1.0 / math.sqrt(fan_in)
    w = jax.random.uniform(k1, (fan_in, fan_out), jnp.float32, -lim, lim)
    b = jax.random.uniform(k2, (1, fan_out), jnp.float32, -lim, lim)
    return w, b


def _positional_encoding(max_len, d_model):
    position = jnp.arange(max_len, dtype=jnp.float32)[:, None]
    div_term = jnp.exp(jnp.arange(0, d_model, 2, dtype=jnp.float32)
                       * (-math.log(10000.0) / d_model))
    pe = jnp.zeros((max_len, d_model), jnp.float32)
    pe = pe.at[:, 0::2].set(jnp.sin(position * div_term))
    pe = pe.at[:, 1::2].set(jnp.cos(position * div_term))
    return pe


def init_params(key):
    E, A, HID = EMBED_DIM, ACTION_DIMS, HIDDEN_DIMS
    keys = jax.random.split(key, 5 + NLAYERS)
    params = {}

    # fold `* sqrt(E)` embedding scale into weights/bias at init (zero runtime cost)
    ew, eb = _dense_init(keys[0], A, E)
    params['embed_w'] = ew * math.sqrt(E)
    params['embed_b'] = eb * math.sqrt(E)

    # fused, lane-padded output head: columns [0:A]=mu, [A:2A]=logstd, rest zero
    mu_w, mu_b = _dense_init(keys[1], E, A)
    ls_w, ls_b = _dense_init(keys[2], E, A)
    w_head = jnp.zeros((E, HEAD_PAD), jnp.float32)
    w_head = w_head.at[:, :A].set(mu_w).at[:, A:2 * A].set(ls_w)
    b_head = jnp.zeros((1, HEAD_PAD), jnp.float32)
    b_head = b_head.at[:, :A].set(mu_b).at[:, A:2 * A].set(ls_b)
    params['w_head'] = w_head
    params['b_head'] = b_head

    params['prior_mu'] = jax.random.normal(keys[3], (1, A), jnp.float32)
    params['prior_logstd'] = jax.random.normal(keys[4], (1, A), jnp.float32)
    params['pos_enc'] = _positional_encoding(MAX_LEN, E)

    wqkv, bqkv, wo, bo = [], [], [], []
    w1, b1, w2, b2 = [], [], [], []
    ln1_g, ln1_b, ln2_g, ln2_b = [], [], [], []
    for li in range(NLAYERS):
        lk = jax.random.split(keys[5 + li], 6)
        wq, bq = _dense_init(lk[0], E, E)
        wk, bk = _dense_init(lk[1], E, E)
        wv, bv = _dense_init(lk[2], E, E)
        wqkv.append(jnp.concatenate([wq, wk, wv], axis=1))   # [E, 3E]
        bqkv.append(jnp.concatenate([bq, bk, bv], axis=1))   # [1, 3E]
        w, b = _dense_init(lk[3], E, E); wo.append(w); bo.append(b)
        w, b = _dense_init(lk[4], E, HID); w1.append(w); b1.append(b)
        w, b = _dense_init(lk[5], HID, E); w2.append(w); b2.append(b)
        ln1_g.append(jnp.ones((1, E), jnp.float32))
        ln1_b.append(jnp.zeros((1, E), jnp.float32))
        ln2_g.append(jnp.ones((1, E), jnp.float32))
        ln2_b.append(jnp.zeros((1, E), jnp.float32))

    params['wqkv'] = jnp.stack(wqkv); params['bqkv'] = jnp.stack(bqkv)
    params['wo'] = jnp.stack(wo);     params['bo'] = jnp.stack(bo)
    params['w1'] = jnp.stack(w1);     params['b1'] = jnp.stack(b1)
    params['w2'] = jnp.stack(w2);     params['b2'] = jnp.stack(b2)
    params['ln1_g'] = jnp.stack(ln1_g); params['ln1_b'] = jnp.stack(ln1_b)
    params['ln2_g'] = jnp.stack(ln2_g); params['ln2_b'] = jnp.stack(ln2_b)
    return params


# ------------------------------- forward pass --------------------------------

def continuous_action_transformer_forward(actions, params):
    """actions: [S, B, ACTION_DIMS] -> (mu_last [B, A], std_last [B, A])."""
    S, B, A = actions.shape
    E, HID, L = EMBED_DIM, HIDDEN_DIMS, NLAYERS

    # batch-major layout so each grid step owns one independent sequence
    acts_bm = jnp.transpose(actions, (1, 0, 2))           # [B, S, A]
    pos = params['pos_enc'][:S]                           # [S, E]

    in_specs = [
        pl.BlockSpec((1, S, A), lambda b: (b, 0, 0)),     # per-batch actions
        _const_spec((S, E)),                              # positional encoding
        _const_spec((A, E)),                              # embed_w (scale folded)
        _const_spec((1, E)),                              # embed_b
        _const_spec((L, E, 3 * E)),                       # wqkv (fused)
        _const_spec((L, 1, 3 * E)),                       # bqkv
        _const_spec((L, E, E)),                           # wo
        _const_spec((L, 1, E)),                           # bo
        _const_spec((L, 1, E)),                           # ln1_g
        _const_spec((L, 1, E)),                           # ln1_b
        _const_spec((L, E, HID)),                         # w1
        _const_spec((L, 1, HID)),                         # b1
        _const_spec((L, HID, E)),                         # w2
        _const_spec((L, 1, E)),                           # b2
        _const_spec((L, 1, E)),                           # ln2_g
        _const_spec((L, 1, E)),                           # ln2_b
        _const_spec((E, HEAD_PAD)),                       # fused mu/logstd head W
        _const_spec((1, HEAD_PAD)),                       # fused mu/logstd head b
    ]

    out = pl.pallas_call(
        functools.partial(_fused_forward_kernel,
                          seq_len=S, nlayers=NLAYERS, nheads=NHEADS),
        out_shape=jax.ShapeDtypeStruct((B, 1, HEAD_PAD), jnp.float32),
        grid=(B,),
        in_specs=in_specs,
        out_specs=pl.BlockSpec((1, 1, HEAD_PAD), lambda b: (b, 0, 0)),
        scratch_shapes=[pltpu.VMEM((S, E), jnp.float32)],  # attention assembly
        compiler_params=pltpu.CompilerParams(
            dimension_semantics=("parallel",)),            # v7x: shard batch over TCs
    )(acts_bm, pos,
      params['embed_w'], params['embed_b'],
      params['wqkv'], params['bqkv'], params['wo'], params['bo'],
      params['ln1_g'], params['ln1_b'], params['w1'], params['b1'],
      params['w2'], params['b2'], params['ln2_g'], params['ln2_b'],
      params['w_head'], params['b_head'])

    mu_last = out[:, 0, :A]
    std_last = out[:, 0, A:2 * A]        # exp(logstd) already applied in-kernel
    return mu_last, std_last


if __name__ == "__main__":
    key = jax.random.PRNGKey(0)
    pkey, akey = jax.random.split(key)
    params = init_params(pkey)

    S, B = 8, 2
    actions = jax.random.normal(akey, (S, B, ACTION_DIMS), jnp.float32)

    fwd = jax.jit(continuous_action_transformer_forward)
    mu_last, std_last = fwd(actions, params)
    jax.block_until_ready((mu_last, std_last))

    assert mu_last.shape == (B, ACTION_DIMS)
    assert std_last.shape == (B, ACTION_DIMS)
    assert bool(jnp.all(jnp.isfinite(mu_last))) and bool(jnp.all(std_last > 0))
    print("KERNEL_OK")
</pallas_src>

<mosaic_0001>
module attributes {stable_mosaic.version = 11 : i64} {
  func.func @_fused_forward_kernel(%arg0: i32, %arg1: memref<1x8x6xf32, #tpu.memory_space<vmem>>, %arg2: memref<8x32xf32, #tpu.memory_space<vmem>>, %arg3: memref<6x32xf32, #tpu.memory_space<vmem>>, %arg4: memref<1x32xf32, #tpu.memory_space<vmem>>, %arg5: memref<2x32x96xf32, #tpu.memory_space<vmem>>, %arg6: memref<2x1x96xf32, #tpu.memory_space<vmem>>, %arg7: memref<2x32x32xf32, #tpu.memory_space<vmem>>, %arg8: memref<2x1x32xf32, #tpu.memory_space<vmem>>, %arg9: memref<2x1x32xf32, #tpu.memory_space<vmem>>, %arg10: memref<2x1x32xf32, #tpu.memory_space<vmem>>, %arg11: memref<2x32x64xf32, #tpu.memory_space<vmem>>, %arg12: memref<2x1x64xf32, #tpu.memory_space<vmem>>, %arg13: memref<2x64x32xf32, #tpu.memory_space<vmem>>, %arg14: memref<2x1x32xf32, #tpu.memory_space<vmem>>, %arg15: memref<2x1x32xf32, #tpu.memory_space<vmem>>, %arg16: memref<2x1x32xf32, #tpu.memory_space<vmem>>, %arg17: memref<32x128xf32, #tpu.memory_space<vmem>>, %arg18: memref<1x128xf32, #tpu.memory_space<vmem>>, %arg19: memref<1x1x128xf32, #tpu.memory_space<vmem>>, %arg20: memref<8x32xf32, #tpu.memory_space<vmem>>) attributes {dimension_semantics = [#tpu.dimension_semantics<parallel>], iteration_bounds = array<i64: 2>, scalar_prefetch = 0 : i64, scratch_operands = 1 : i64, tpu.core_type = #tpu.core_type<tc>, window_params = [{transform_indices = @transform_0, window_bounds = array<i64: 1, 8, 6>}, {pipeline_mode = #tpu.pipeline_mode<synchronous>, transform_indices = @transform_1, window_bounds = array<i64: 8, 32>}, {pipeline_mode = #tpu.pipeline_mode<synchronous>, transform_indices = @transform_2, window_bounds = array<i64: 6, 32>}, {pipeline_mode = #tpu.pipeline_mode<synchronous>, transform_indices = @transform_3, window_bounds = array<i64: 1, 32>}, {pipeline_mode = #tpu.pipeline_mode<synchronous>, transform_indices = @transform_4, window_bounds = array<i64: 2, 32, 96>}, {pipeline_mode = #tpu.pipeline_mode<synchronous>, transform_indices = @transform_5, window_bounds = array<i64: 2, 1, 96>}, {pipeline_mode = #tpu.pipeline_mode<synchronous>, transform_indices = @transform_6, window_bounds = array<i64: 2, 32, 32>}, {pipeline_mode = #tpu.pipeline_mode<synchronous>, transform_indices = @transform_7, window_bounds = array<i64: 2, 1, 32>}, {pipeline_mode = #tpu.pipeline_mode<synchronous>, transform_indices = @transform_8, window_bounds = array<i64: 2, 1, 32>}, {pipeline_mode = #tpu.pipeline_mode<synchronous>, transform_indices = @transform_9, window_bounds = array<i64: 2, 1, 32>}, {pipeline_mode = #tpu.pipeline_mode<synchronous>, transform_indices = @transform_10, window_bounds = array<i64: 2, 32, 64>}, {pipeline_mode = #tpu.pipeline_mode<synchronous>, transform_indices = @transform_11, window_bounds = array<i64: 2, 1, 64>}, {pipeline_mode = #tpu.pipeline_mode<synchronous>, transform_indices = @transform_12, window_bounds = array<i64: 2, 64, 32>}, {pipeline_mode = #tpu.pipeline_mode<synchronous>, transform_indices = @transform_13, window_bounds = array<i64: 2, 1, 32>}, {pipeline_mode = #tpu.pipeline_mode<synchronous>, transform_indices = @transform_14, window_bounds = array<i64: 2, 1, 32>}, {pipeline_mode = #tpu.pipeline_mode<synchronous>, transform_indices = @transform_15, window_bounds = array<i64: 2, 1, 32>}, {pipeline_mode = #tpu.pipeline_mode<synchronous>, transform_indices = @transform_16, window_bounds = array<i64: 32, 128>}, {pipeline_mode = #tpu.pipeline_mode<synchronous>, transform_indices = @transform_17, window_bounds = array<i64: 1, 128>}, {transform_indices = @transform_18, window_bounds = array<i64: 1, 1, 128>}]} {
    %c0 = arith.constant 0 : index
    %c0_0 = arith.constant 0 : index
    %c0_1 = arith.constant 0 : index
    %0 = vector.load %arg1[%c0, %c0_0, %c0_1] : memref<1x8x6xf32, #tpu.memory_space<vmem>>, vector<1x8x6xf32>
    %1 = vector.shape_cast %0 : vector<1x8x6xf32> to vector<8x6xf32>
    %c0_2 = arith.constant 0 : index
    %c0_3 = arith.constant 0 : index
    %2 = vector.load %arg3[%c0_2, %c0_3] : memref<6x32xf32, #tpu.memory_space<vmem>>, vector<6x32xf32>
    %cst = arith.constant dense<0.000000e+00> : vector<8x32xf32>
    %3 = tpu.matmul %1, %2, %cst {dimension_numbers = #tpu.dot_dimension_numbers<[1], [0], [0], [1], [0, 0, 1, 1], [], []>} : vector<8x6xf32>, vector<6x32xf32>, vector<8x32xf32> -> vector<8x32xf32>
    %c0_4 = arith.constant 0 : index
    %c0_5 = arith.constant 0 : index
    %4 = vector.load %arg4[%c0_4, %c0_5] : memref<1x32xf32, #tpu.memory_space<vmem>>, vector<1x32xf32>
    %5 = vector.broadcast %4 : vector<1x32xf32> to vector<8x32xf32>
    %6 = arith.addf %3, %5 : vector<8x32xf32>
    %c0_6 = arith.constant 0 : index
    %c0_7 = arith.constant 0 : index
    %7 = vector.load %arg2[%c0_6, %c0_7] : memref<8x32xf32, #tpu.memory_space<vmem>>, vector<8x32xf32>
    %8 = arith.addf %6, %7 : vector<8x32xf32>
    %c0_8 = arith.constant 0 : index
    %c0_9 = arith.constant 0 : index
    %c0_10 = arith.constant 0 : index
    %9 = vector.load %arg5[%c0_8, %c0_9, %c0_10] : memref<2x32x96xf32, #tpu.memory_space<vmem>>, vector<1x32x96xf32>
    %10 = vector.shape_cast %9 : vector<1x32x96xf32> to vector<32x96xf32>
    %cst_11 = arith.constant dense<0.000000e+00> : vector<8x96xf32>
    %11 = tpu.matmul %8, %10, %cst_11 {dimension_numbers = #tpu.dot_dimension_numbers<[1], [0], [0], [1], [0, 0, 1, 1], [], []>} : vector<8x32xf32>, vector<32x96xf32>, vector<8x96xf32> -> vector<8x96xf32>
    %c0_12 = arith.constant 0 : index
    %c0_13 = arith.constant 0 : index
    %c0_14 = arith.constant 0 : index
    %12 = vector.load %arg6[%c0_12, %c0_13, %c0_14] : memref<2x1x96xf32, #tpu.memory_space<vmem>>, vector<1x1x96xf32>
    %13 = vector.shape_cast %12 : vector<1x1x96xf32> to vector<1x96xf32>
    %14 = vector.broadcast %13 : vector<1x96xf32> to vector<8x96xf32>
    %15 = arith.addf %11, %14 : vector<8x96xf32>
    %16 = vector.extract_strided_slice %15 {offsets = [0, 0], sizes = [8, 32], strides = [1, 1]} : vector<8x96xf32> to vector<8x32xf32>
    %17 = vector.extract_strided_slice %15 {offsets = [0, 32], sizes = [8, 32], strides = [1, 1]} : vector<8x96xf32> to vector<8x32xf32>
    %18 = vector.extract_strided_slice %15 {offsets = [0, 64], sizes = [8, 32], strides = [1, 1]} : vector<8x96xf32> to vector<8x32xf32>
    %19 = vector.extract_strided_slice %16 {offsets = [0, 0], sizes = [8, 8], strides = [1, 1]} : vector<8x32xf32> to vector<8x8xf32>
    %20 = vector.extract_strided_slice %17 {offsets = [0, 0], sizes = [8, 8], strides = [1, 1]} : vector<8x32xf32> to vector<8x8xf32>
    %21 = vector.extract_strided_slice %18 {offsets = [0, 0], sizes = [8, 8], strides = [1, 1]} : vector<8x32xf32> to vector<8x8xf32>
    %cst_15 = arith.constant dense<0.000000e+00> : vector<8x8xf32>
    %22 = tpu.matmul %19, %20, %cst_15 {dimension_numbers = #tpu.dot_dimension_numbers<[1], [1], [0], [0], [0, 0, 1, 0], [], []>} : vector<8x8xf32>, vector<8x8xf32>, vector<8x8xf32> -> vector<8x8xf32>
    %cst_16 = arith.constant 0.353553385 : f32
    %23 = vector.broadcast %cst_16 : f32 to vector<8x8xf32>
    %24 = arith.mulf %22, %23 : vector<8x8xf32>
    %cst_17 = arith.constant dense<0xFF800000> : vector<8xf32>
    %25 = vector.multi_reduction <maximumf>, %24, %cst_17 [1] : vector<8x8xf32> to vector<8xf32>
    %26 = vector.shape_cast %25 : vector<8xf32> to vector<8x1xf32>
    %27 = vector.broadcast %26 : vector<8x1xf32> to vector<8x8xf32>
    %28 = arith.subf %24, %27 : vector<8x8xf32>
    %29 = math.exp %28 : vector<8x8xf32>
    %cst_18 = arith.constant dense<0.000000e+00> : vector<8xf32>
    %30 = vector.multi_reduction <add>, %29, %cst_18 [1] : vector<8x8xf32> to vector<8xf32>
    %31 = vector.shape_cast %30 : vector<8xf32> to vector<8x1xf32>
    %32 = tpu.reciprocal %31 {approx = true} : vector<8x1xf32> -> vector<8x1xf32>
    %33 = vector.broadcast %32 : vector<8x1xf32> to vector<8x8xf32>
    %34 = arith.mulf %29, %33 : vector<8x8xf32>
    %cst_19 = arith.constant dense<0.000000e+00> : vector<8x8xf32>
    %35 = tpu.matmul %34, %21, %cst_19 {dimension_numbers = #tpu.dot_dimension_numbers<[1], [0], [0], [1], [0, 0, 1, 1], [], []>} : vector<8x8xf32>, vector<8x8xf32>, vector<8x8xf32> -> vector<8x8xf32>
    %c0_20 = arith.constant 0 : index
    %c0_21 = arith.constant 0 : index
    %36 = vector.load %arg20[%c0_20, %c0_21] : memref<8x32xf32, #tpu.memory_space<vmem>>, vector<8x8xf32>
    tpu.vector_store %arg20[%c0_20, %c0_21], %35 {strides = array<i32>} : memref<8x32xf32, #tpu.memory_space<vmem>>, vector<8x8xf32>,
    %37 = vector.extract_strided_slice %16 {offsets = [0, 8], sizes = [8, 8], strides = [1, 1]} : vector<8x32xf32> to vector<8x8xf32>
    %38 = vector.extract_strided_slice %17 {offsets = [0, 8], sizes = [8, 8], strides = [1, 1]} : vector<8x32xf32> to vector<8x8xf32>
    %39 = vector.extract_strided_slice %18 {offsets = [0, 8], sizes = [8, 8], strides = [1, 1]} : vector<8x32xf32> to vector<8x8xf32>
    %cst_22 = arith.constant dense<0.000000e+00> : vector<8x8xf32>
    %40 = tpu.matmul %37, %38, %cst_22 {dimension_numbers = #tpu.dot_dimension_numbers<[1], [1], [0], [0], [0, 0, 1, 0], [], []>} : vector<8x8xf32>, vector<8x8xf32>, vector<8x8xf32> -> vector<8x8xf32>
    %cst_23 = arith.constant 0.353553385 : f32
    %41 = vector.broadcast %cst_23 : f32 to vector<8x8xf32>
    %42 = arith.mulf %40, %41 : vector<8x8xf32>
    %cst_24 = arith.constant dense<0xFF800000> : vector<8xf32>
    %43 = vector.multi_reduction <maximumf>, %42, %cst_24 [1] : vector<8x8xf32> to vector<8xf32>
    %44 = vector.shape_cast %43 : vector<8xf32> to vector<8x1xf32>
    %45 = vector.broadcast %44 : vector<8x1xf32> to vector<8x8xf32>
    %46 = arith.subf %42, %45 : vector<8x8xf32>
    %47 = math.exp %46 : vector<8x8xf32>
    %cst_25 = arith.constant dense<0.000000e+00> : vector<8xf32>
    %48 = vector.multi_reduction <add>, %47, %cst_25 [1] : vector<8x8xf32> to vector<8xf32>
    %49 = vector.shape_cast %48 : vector<8xf32> to vector<8x1xf32>
    %50 = tpu.reciprocal %49 {approx = true} : vector<8x1xf32> -> vector<8x1xf32>
    %51 = vector.broadcast %50 : vector<8x1xf32> to vector<8x8xf32>
    %52 = arith.mulf %47, %51 : vector<8x8xf32>
    %cst_26 = arith.constant dense<0.000000e+00> : vector<8x8xf32>
    %53 = tpu.matmul %52, %39, %cst_26 {dimension_numbers = #tpu.dot_dimension_numbers<[1], [0], [0], [1], [0, 0, 1, 1], [], []>} : vector<8x8xf32>, vector<8x8xf32>, vector<8x8xf32> -> vector<8x8xf32>
    %c0_27 = arith.constant 0 : index
    %c8 = arith.constant 8 : index
    %54 = vector.load %arg20[%c0_27, %c8] : memref<8x32xf32, #tpu.memory_space<vmem>>, vector<8x8xf32>
    tpu.vector_store %arg20[%c0_27, %c8], %53 {strides = array<i32>} : memref<8x32xf32, #tpu.memory_space<vmem>>, vector<8x8xf32>,
    %55 = vector.extract_strided_slice %16 {offsets = [0, 16], sizes = [8, 8], strides = [1, 1]} : vector<8x32xf32> to vector<8x8xf32>
    %56 = vector.extract_strided_slice %17 {offsets = [0, 16], sizes = [8, 8], strides = [1, 1]} : vector<8x32xf32> to vector<8x8xf32>
    %57 = vector.extract_strided_slice %18 {offsets = [0, 16], sizes = [8, 8], strides = [1, 1]} : vector<8x32xf32> to vector<8x8xf32>
    %cst_28 = arith.constant dense<0.000000e+00> : vector<8x8xf32>
    %58 = tpu.matmul %55, %56, %cst_28 {dimension_numbers = #tpu.dot_dimension_numbers<[1], [1], [0], [0], [0, 0, 1, 0], [], []>} : vector<8x8xf32>, vector<8x8xf32>, vector<8x8xf32> -> vector<8x8xf32>
    %cst_29 = arith.constant 0.353553385 : f32
    %59 = vector.broadcast %cst_29 : f32 to vector<8x8xf32>
    %60 = arith.mulf %58, %59 : vector<8x8xf32>
    %cst_30 = arith.constant dense<0xFF800000> : vector<8xf32>
    %61 = vector.multi_reduction <maximumf>, %60, %cst_30 [1] : vector<8x8xf32> to vector<8xf32>
    %62 = vector.shape_cast %61 : vector<8xf32> to vector<8x1xf32>
    %63 = vector.broadcast %62 : vector<8x1xf32> to vector<8x8xf32>
    %64 = arith.subf %60, %63 : vector<8x8xf32>
    %65 = math.exp %64 : vector<8x8xf32>
    %cst_31 = arith.constant dense<0.000000e+00> : vector<8xf32>
    %66 = vector.multi_reduction <add>, %65, %cst_31 [1] : vector<8x8xf32> to vector<8xf32>
    %67 = vector.shape_cast %66 : vector<8xf32> to vector<8x1xf32>
    %68 = tpu.reciprocal %67 {approx = true} : vector<8x1xf32> -> vector<8x1xf32>
    %69 = vector.broadcast %68 : vector<8x1xf32> to vector<8x8xf32>
    %70 = arith.mulf %65, %69 : vector<8x8xf32>
    %cst_32 = arith.constant dense<0.000000e+00> : vector<8x8xf32>
    %71 = tpu.matmul %70, %57, %cst_32 {dimension_numbers = #tpu.dot_dimension_numbers<[1], [0], [0], [1], [0, 0, 1, 1], [], []>} : vector<8x8xf32>, vector<8x8xf32>, vector<8x8xf32> -> vector<8x8xf32>
    %c0_33 = arith.constant 0 : index
    %c16 = arith.constant 16 : index
    %72 = vector.load %arg20[%c0_33, %c16] : memref<8x32xf32, #tpu.memory_space<vmem>>, vector<8x8xf32>
    tpu.vector_store %arg20[%c0_33, %c16], %71 {strides = array<i32>} : memref<8x32xf32, #tpu.memory_space<vmem>>, vector<8x8xf32>,
    %73 = vector.extract_strided_slice %16 {offsets = [0, 24], sizes = [8, 8], strides = [1, 1]} : vector<8x32xf32> to vector<8x8xf32>
    %74 = vector.extract_strided_slice %17 {offsets = [0, 24], sizes = [8, 8], strides = [1, 1]} : vector<8x32xf32> to vector<8x8xf32>
    %75 = vector.extract_strided_slice %18 {offsets = [0, 24], sizes = [8, 8], strides = [1, 1]} : vector<8x32xf32> to vector<8x8xf32>
    %cst_34 = arith.constant dense<0.000000e+00> : vector<8x8xf32>
    %76 = tpu.matmul %73, %74, %cst_34 {dimension_numbers = #tpu.dot_dimension_numbers<[1], [1], [0], [0], [0, 0, 1, 0], [], []>} : vector<8x8xf32>, vector<8x8xf32>, vector<8x8xf32> -> vector<8x8xf32>
    %cst_35 = arith.constant 0.353553385 : f32
    %77 = vector.broadcast %cst_35 : f32 to vector<8x8xf32>
    %78 = arith.mulf %76, %77 : vector<8x8xf32>
    %cst_36 = arith.constant dense<0xFF800000> : vector<8xf32>
    %79 = vector.multi_reduction <maximumf>, %78, %cst_36 [1] : vector<8x8xf32> to vector<8xf32>
    %80 = vector.shape_cast %79 : vector<8xf32> to vector<8x1xf32>
    %81 = vector.broadcast %80 : vector<8x1xf32> to vector<8x8xf32>
    %82 = arith.subf %78, %81 : vector<8x8xf32>
    %83 = math.exp %82 : vector<8x8xf32>
    %cst_37 = arith.constant dense<0.000000e+00> : vector<8xf32>
    %84 = vector.multi_reduction <add>, %83, %cst_37 [1] : vector<8x8xf32> to vector<8xf32>
    %85 = vector.shape_cast %84 : vector<8xf32> to vector<8x1xf32>
    %86 = tpu.reciprocal %85 {approx = true} : vector<8x1xf32> -> vector<8x1xf32>
    %87 = vector.broadcast %86 : vector<8x1xf32> to vector<8x8xf32>
    %88 = arith.mulf %83, %87 : vector<8x8xf32>
    %cst_38 = arith.constant dense<0.000000e+00> : vector<8x8xf32>
    %89 = tpu.matmul %88, %75, %cst_38 {dimension_numbers = #tpu.dot_dimension_numbers<[1], [0], [0], [1], [0, 0, 1, 1], [], []>} : vector<8x8xf32>, vector<8x8xf32>, vector<8x8xf32> -> vector<8x8xf32>
    %c0_39 = arith.constant 0 : index
    %c24 = arith.constant 24 : index
    %90 = vector.load %arg20[%c0_39, %c24] : memref<8x32xf32, #tpu.memory_space<vmem>>, vector<8x8xf32>
    tpu.vector_store %arg20[%c0_39, %c24], %89 {strides = array<i32>} : memref<8x32xf32, #tpu.memory_space<vmem>>, vector<8x8xf32>,
    %c0_40 = arith.constant 0 : index
    %c0_41 = arith.constant 0 : index
    %91 = vector.load %arg20[%c0_40, %c0_41] : memref<8x32xf32, #tpu.memory_space<vmem>>, vector<8x32xf32>
    %c0_42 = arith.constant 0 : index
    %c0_43 = arith.constant 0 : index
    %c0_44 = arith.constant 0 : index
    %92 = vector.load %arg7[%c0_42, %c0_43, %c0_44] : memref<2x32x32xf32, #tpu.memory_space<vmem>>, vector<1x32x32xf32>
    %93 = vector.shape_cast %92 : vector<1x32x32xf32> to vector<32x32xf32>
    %cst_45 = arith.constant dense<0.000000e+00> : vector<8x32xf32>
    %94 = tpu.matmul %91, %93, %cst_45 {dimension_numbers = #tpu.dot_dimension_numbers<[1], [0], [0], [1], [0, 0, 1, 1], [], []>} : vector<8x32xf32>, vector<32x32xf32>, vector<8x32xf32> -> vector<8x32xf32>
    %c0_46 = arith.constant 0 : index
    %c0_47 = arith.constant 0 : index
    %c0_48 = arith.constant 0 : index
    %95 = vector.load %arg8[%c0_46, %c0_47, %c0_48] : memref<2x1x32xf32, #tpu.memory_space<vmem>>, vector<1x1x32xf32>
    %96 = vector.shape_cast %95 : vector<1x1x32xf32> to vector<1x32xf32>
    %97 = vector.broadcast %96 : vector<1x32xf32> to vector<8x32xf32>
    %98 = arith.addf %94, %97 : vector<8x32xf32>
    %99 = arith.addf %8, %98 : vector<8x32xf32>
    %c0_49 = arith.constant 0 : index
    %c0_50 = arith.constant 0 : index
    %c0_51 = arith.constant 0 : index
    %100 = vector.load %arg9[%c0_49, %c0_50, %c0_51] : memref<2x1x32xf32, #tpu.memory_space<vmem>>, vector<1x1x32xf32>
    %101 = vector.shape_cast %100 : vector<1x1x32xf32> to vector<1x32xf32>
    %c0_52 = arith.constant 0 : index
    %c0_53 = arith.constant 0 : index
    %c0_54 = arith.constant 0 : index
    %102 = vector.load %arg10[%c0_52, %c0_53, %c0_54] : memref<2x1x32xf32, #tpu.memory_space<vmem>>, vector<1x1x32xf32>
    %103 = vector.shape_cast %102 : vector<1x1x32xf32> to vector<1x32xf32>
    %cst_55 = arith.constant dense<0.000000e+00> : vector<8xf32>
    %104 = vector.multi_reduction <add>, %99, %cst_55 [1] : vector<8x32xf32> to vector<8xf32>
    %105 = vector.shape_cast %104 : vector<8xf32> to vector<8x1xf32>
    %cst_56 = arith.constant 3.200000e+01 : f32
    %106 = vector.broadcast %cst_56 : f32 to vector<8x1xf32>
    %107 = arith.divf %105, %106 : vector<8x1xf32>
    %108 = vector.broadcast %107 : vector<8x1xf32> to vector<8x32xf32>
    %109 = arith.subf %99, %108 : vector<8x32xf32>
    %110 = arith.mulf %109, %109 : vector<8x32xf32>
    %cst_57 = arith.constant dense<0.000000e+00> : vector<8xf32>
    %111 = vector.multi_reduction <add>, %110, %cst_57 [1] : vector<8x32xf32> to vector<8xf32>
    %112 = vector.shape_cast %111 : vector<8xf32> to vector<8x1xf32>
    %cst_58 = arith.constant 3.200000e+01 : f32
    %113 = vector.broadcast %cst_58 : f32 to vector<8x1xf32>
    %114 = arith.divf %112, %113 : vector<8x1xf32>
    %115 = vector.broadcast %107 : vector<8x1xf32> to vector<8x32xf32>
    %116 = arith.subf %99, %115 : vector<8x32xf32>
    %cst_59 = arith.constant 9.99999974E-6 : f32
    %117 = vector.broadcast %cst_59 : f32 to vector<8x1xf32>
    %118 = arith.addf %114, %117 : vector<8x1xf32>
    %119 = math.rsqrt %118 : vector<8x1xf32>
    %120 = vector.broadcast %119 : vector<8x1xf32> to vector<8x32xf32>
    %121 = arith.mulf %116, %120 : vector<8x32xf32>
    %122 = vector.broadcast %101 : vector<1x32xf32> to vector<8x32xf32>
    %123 = arith.mulf %121, %122 : vector<8x32xf32>
    %124 = vector.broadcast %103 : vector<1x32xf32> to vector<8x32xf32>
    %125 = arith.addf %123, %124 : vector<8x32xf32>
    %c0_60 = arith.constant 0 : index
    %c0_61 = arith.constant 0 : index
    %c0_62 = arith.constant 0 : index
    %126 = vector.load %arg11[%c0_60, %c0_61, %c0_62] : memref<2x32x64xf32, #tpu.memory_space<vmem>>, vector<1x32x64xf32>
    %127 = vector.shape_cast %126 : vector<1x32x64xf32> to vector<32x64xf32>
    %cst_63 = arith.constant dense<0.000000e+00> : vector<8x64xf32>
    %128 = tpu.matmul %125, %127, %cst_63 {dimension_numbers = #tpu.dot_dimension_numbers<[1], [0], [0], [1], [0, 0, 1, 1], [], []>} : vector<8x32xf32>, vector<32x64xf32>, vector<8x64xf32> -> vector<8x64xf32>
    %c0_64 = arith.constant 0 : index
    %c0_65 = arith.constant 0 : index
    %c0_66 = arith.constant 0 : index
    %129 = vector.load %arg12[%c0_64, %c0_65, %c0_66] : memref<2x1x64xf32, #tpu.memory_space<vmem>>, vector<1x1x64xf32>
    %130 = vector.shape_cast %129 : vector<1x1x64xf32> to vector<1x64xf32>
    %131 = vector.broadcast %130 : vector<1x64xf32> to vector<8x64xf32>
    %132 = arith.addf %128, %131 : vector<8x64xf32>
    %cst_67 = arith.constant 0.000000e+00 : f32
    %133 = vector.broadcast %cst_67 : f32 to vector<8x64xf32>
    %134 = arith.maximumf %132, %133 : vector<8x64xf32>
    %c0_68 = arith.constant 0 : index
    %c0_69 = arith.constant 0 : index
    %c0_70 = arith.constant 0 : index
    %135 = vector.load %arg13[%c0_68, %c0_69, %c0_70] : memref<2x64x32xf32, #tpu.memory_space<vmem>>, vector<1x64x32xf32>
    %136 = vector.shape_cast %135 : vector<1x64x32xf32> to vector<64x32xf32>
    %cst_71 = arith.constant dense<0.000000e+00> : vector<8x32xf32>
    %137 = tpu.matmul %134, %136, %cst_71 {dimension_numbers = #tpu.dot_dimension_numbers<[1], [0], [0], [1], [0, 0, 1, 1], [], []>} : vector<8x64xf32>, vector<64x32xf32>, vector<8x32xf32> -> vector<8x32xf32>
    %c0_72 = arith.constant 0 : index
    %c0_73 = arith.constant 0 : index
    %c0_74 = arith.constant 0 : index
    %138 = vector.load %arg14[%c0_72, %c0_73, %c0_74] : memref<2x1x32xf32, #tpu.memory_space<vmem>>, vector<1x1x32xf32>
    %139 = vector.shape_cast %138 : vector<1x1x32xf32> to vector<1x32xf32>
    %140 = vector.broadcast %139 : vector<1x32xf32> to vector<8x32xf32>
    %141 = arith.addf %137, %140 : vector<8x32xf32>
    %142 = arith.addf %125, %141 : vector<8x32xf32>
    %c0_75 = arith.constant 0 : index
    %c0_76 = arith.constant 0 : index
    %c0_77 = arith.constant 0 : index
    %143 = vector.load %arg15[%c0_75, %c0_76, %c0_77] : memref<2x1x32xf32, #tpu.memory_space<vmem>>, vector<1x1x32xf32>
    %144 = vector.shape_cast %143 : vector<1x1x32xf32> to vector<1x32xf32>
    %c0_78 = arith.constant 0 : index
    %c0_79 = arith.constant 0 : index
    %c0_80 = arith.constant 0 : index
    %145 = vector.load %arg16[%c0_78, %c0_79, %c0_80] : memref<2x1x32xf32, #tpu.memory_space<vmem>>, vector<1x1x32xf32>
    %146 = vector.shape_cast %145 : vector<1x1x32xf32> to vector<1x32xf32>
    %cst_81 = arith.constant dense<0.000000e+00> : vector<8xf32>
    %147 = vector.multi_reduction <add>, %142, %cst_81 [1] : vector<8x32xf32> to vector<8xf32>
    %148 = vector.shape_cast %147 : vector<8xf32> to vector<8x1xf32>
    %cst_82 = arith.constant 3.200000e+01 : f32
    %149 = vector.broadcast %cst_82 : f32 to vector<8x1xf32>
    %150 = arith.divf %148, %149 : vector<8x1xf32>
    %151 = vector.broadcast %150 : vector<8x1xf32> to vector<8x32xf32>
    %152 = arith.subf %142, %151 : vector<8x32xf32>
    %153 = arith.mulf %152, %152 : vector<8x32xf32>
    %cst_83 = arith.constant dense<0.000000e+00> : vector<8xf32>
    %154 = vector.multi_reduction <add>, %153, %cst_83 [1] : vector<8x32xf32> to vector<8xf32>
    %155 = vector.shape_cast %154 : vector<8xf32> to vector<8x1xf32>
    %cst_84 = arith.constant 3.200000e+01 : f32
    %156 = vector.broadcast %cst_84 : f32 to vector<8x1xf32>
    %157 = arith.divf %155, %156 : vector<8x1xf32>
    %158 = vector.broadcast %150 : vector<8x1xf32> to vector<8x32xf32>
    %159 = arith.subf %142, %158 : vector<8x32xf32>
    %cst_85 = arith.constant 9.99999974E-6 : f32
    %160 = vector.broadcast %cst_85 : f32 to vector<8x1xf32>
    %161 = arith.addf %157, %160 : vector<8x1xf32>
    %162 = math.rsqrt %161 : vector<8x1xf32>
    %163 = vector.broadcast %162 : vector<8x1xf32> to vector<8x32xf32>
    %164 = arith.mulf %159, %163 : vector<8x32xf32>
    %165 = vector.broadcast %144 : vector<1x32xf32> to vector<8x32xf32>
    %166 = arith.mulf %164, %165 : vector<8x32xf32>
    %167 = vector.broadcast %146 : vector<1x32xf32> to vector<8x32xf32>
    %168 = arith.addf %166, %167 : vector<8x32xf32>
    %c1 = arith.constant 1 : index
    %c0_86 = arith.constant 0 : index
    %c0_87 = arith.constant 0 : index
    %169 = vector.load %arg5[%c1, %c0_86, %c0_87] : memref<2x32x96xf32, #tpu.memory_space<vmem>>, vector<1x32x96xf32>
    %170 = vector.shape_cast %169 : vector<1x32x96xf32> to vector<32x96xf32>
    %cst_88 = arith.constant dense<0.000000e+00> : vector<8x96xf32>
    %171 = tpu.matmul %168, %170, %cst_88 {dimension_numbers = #tpu.dot_dimension_numbers<[1], [0], [0], [1], [0, 0, 1, 1], [], []>} : vector<8x32xf32>, vector<32x96xf32>, vector<8x96xf32> -> vector<8x96xf32>
    %c1_89 = arith.constant 1 : index
    %c0_90 = arith.constant 0 : index
    %c0_91 = arith.constant 0 : index
    %172 = vector.load %arg6[%c1_89, %c0_90, %c0_91] : memref<2x1x96xf32, #tpu.memory_space<vmem>>, vector<1x1x96xf32>
    %173 = vector.shape_cast %172 : vector<1x1x96xf32> to vector<1x96xf32>
    %174 = vector.broadcast %173 : vector<1x96xf32> to vector<8x96xf32>
    %175 = arith.addf %171, %174 : vector<8x96xf32>
    %176 = vector.extract_strided_slice %175 {offsets = [0, 0], sizes = [8, 32], strides = [1, 1]} : vector<8x96xf32> to vector<8x32xf32>
    %177 = vector.extract_strided_slice %175 {offsets = [0, 32], sizes = [8, 32], strides = [1, 1]} : vector<8x96xf32> to vector<8x32xf32>
    %178 = vector.extract_strided_slice %175 {offsets = [0, 64], sizes = [8, 32], strides = [1, 1]} : vector<8x96xf32> to vector<8x32xf32>
    %179 = vector.extract_strided_slice %176 {offsets = [0, 0], sizes = [8, 8], strides = [1, 1]} : vector<8x32xf32> to vector<8x8xf32>
    %180 = vector.extract_strided_slice %177 {offsets = [0, 0], sizes = [8, 8], strides = [1, 1]} : vector<8x32xf32> to vector<8x8xf32>
    %181 = vector.extract_strided_slice %178 {offsets = [0, 0], sizes = [8, 8], strides = [1, 1]} : vector<8x32xf32> to vector<8x8xf32>
    %cst_92 = arith.constant dense<0.000000e+00> : vector<8x8xf32>
    %182 = tpu.matmul %179, %180, %cst_92 {dimension_numbers = #tpu.dot_dimension_numbers<[1], [1], [0], [0], [0, 0, 1, 0], [], []>} : vector<8x8xf32>, vector<8x8xf32>, vector<8x8xf32> -> vector<8x8xf32>
    %cst_93 = arith.constant 0.353553385 : f32
    %183 = vector.broadcast %cst_93 : f32 to vector<8x8xf32>
    %184 = arith.mulf %182, %183 : vector<8x8xf32>
    %cst_94 = arith.constant dense<0xFF800000> : vector<8xf32>
    %185 = vector.multi_reduction <maximumf>, %184, %cst_94 [1] : vector<8x8xf32> to vector<8xf32>
    %186 = vector.shape_cast %185 : vector<8xf32> to vector<8x1xf32>
    %187 = vector.broadcast %186 : vector<8x1xf32> to vector<8x8xf32>
    %188 = arith.subf %184, %187 : vector<8x8xf32>
    %189 = math.exp %188 : vector<8x8xf32>
    %cst_95 = arith.constant dense<0.000000e+00> : vector<8xf32>
    %190 = vector.multi_reduction <add>, %189, %cst_95 [1] : vector<8x8xf32> to vector<8xf32>
    %191 = vector.shape_cast %190 : vector<8xf32> to vector<8x1xf32>
    %192 = tpu.reciprocal %191 {approx = true} : vector<8x1xf32> -> vector<8x1xf32>
    %193 = vector.broadcast %192 : vector<8x1xf32> to vector<8x8xf32>
    %194 = arith.mulf %189, %193 : vector<8x8xf32>
    %cst_96 = arith.constant dense<0.000000e+00> : vector<8x8xf32>
    %195 = tpu.matmul %194, %181, %cst_96 {dimension_numbers = #tpu.dot_dimension_numbers<[1], [0], [0], [1], [0, 0, 1, 1], [], []>} : vector<8x8xf32>, vector<8x8xf32>, vector<8x8xf32> -> vector<8x8xf32>
    %c0_97 = arith.constant 0 : index
    %c0_98 = arith.constant 0 : index
    %196 = vector.load %arg20[%c0_97, %c0_98] : memref<8x32xf32, #tpu.memory_space<vmem>>, vector<8x8xf32>
    tpu.vector_store %arg20[%c0_97, %c0_98], %195 {strides = array<i32>} : memref<8x32xf32, #tpu.memory_space<vmem>>, vector<8x8xf32>,
    %197 = vector.extract_strided_slice %176 {offsets = [0, 8], sizes = [8, 8], strides = [1, 1]} : vector<8x32xf32> to vector<8x8xf32>
    %198 = vector.extract_strided_slice %177 {offsets = [0, 8], sizes = [8, 8], strides = [1, 1]} : vector<8x32xf32> to vector<8x8xf32>
    %199 = vector.extract_strided_slice %178 {offsets = [0, 8], sizes = [8, 8], strides = [1, 1]} : vector<8x32xf32> to vector<8x8xf32>
    %cst_99 = arith.constant dense<0.000000e+00> : vector<8x8xf32>
    %200 = tpu.matmul %197, %198, %cst_99 {dimension_numbers = #tpu.dot_dimension_numbers<[1], [1], [0], [0], [0, 0, 1, 0], [], []>} : vector<8x8xf32>, vector<8x8xf32>, vector<8x8xf32> -> vector<8x8xf32>
    %cst_100 = arith.constant 0.353553385 : f32
    %201 = vector.broadcast %cst_100 : f32 to vector<8x8xf32>
    %202 = arith.mulf %200, %201 : vector<8x8xf32>
    %cst_101 = arith.constant dense<0xFF800000> : vector<8xf32>
    %203 = vector.multi_reduction <maximumf>, %202, %cst_101 [1] : vector<8x8xf32> to vector<8xf32>
    %204 = vector.shape_cast %203 : vector<8xf32> to vector<8x1xf32>
    %205 = vector.broadcast %204 : vector<8x1xf32> to vector<8x8xf32>
    %206 = arith.subf %202, %205 : vector<8x8xf32>
    %207 = math.exp %206 : vector<8x8xf32>
    %cst_102 = arith.constant dense<0.000000e+00> : vector<8xf32>
    %208 = vector.multi_reduction <add>, %207, %cst_102 [1] : vector<8x8xf32> to vector<8xf32>
    %209 = vector.shape_cast %208 : vector<8xf32> to vector<8x1xf32>
    %210 = tpu.reciprocal %209 {approx = true} : vector<8x1xf32> -> vector<8x1xf32>
    %211 = vector.broadcast %210 : vector<8x1xf32> to vector<8x8xf32>
    %212 = arith.mulf %207, %211 : vector<8x8xf32>
    %cst_103 = arith.constant dense<0.000000e+00> : vector<8x8xf32>
    %213 = tpu.matmul %212, %199, %cst_103 {dimension_numbers = #tpu.dot_dimension_numbers<[1], [0], [0], [1], [0, 0, 1, 1], [], []>} : vector<8x8xf32>, vector<8x8xf32>, vector<8x8xf32> -> vector<8x8xf32>
    %c0_104 = arith.constant 0 : index
    %c8_105 = arith.constant 8 : index
    %214 = vector.load %arg20[%c0_104, %c8_105] : memref<8x32xf32, #tpu.memory_space<vmem>>, vector<8x8xf32>
    tpu.vector_store %arg20[%c0_104, %c8_105], %213 {strides = array<i32>} : memref<8x32xf32, #tpu.memory_space<vmem>>, vector<8x8xf32>,
    %215 = vector.extract_strided_slice %176 {offsets = [0, 16], sizes = [8, 8], strides = [1, 1]} : vector<8x32xf32> to vector<8x8xf32>
    %216 = vector.extract_strided_slice %177 {offsets = [0, 16], sizes = [8, 8], strides = [1, 1]} : vector<8x32xf32> to vector<8x8xf32>
    %217 = vector.extract_strided_slice %178 {offsets = [0, 16], sizes = [8, 8], strides = [1, 1]} : vector<8x32xf32> to vector<8x8xf32>
    %cst_106 = arith.constant dense<0.000000e+00> : vector<8x8xf32>
    %218 = tpu.matmul %215, %216, %cst_106 {dimension_numbers = #tpu.dot_dimension_numbers<[1], [1], [0], [0], [0, 0, 1, 0], [], []>} : vector<8x8xf32>, vector<8x8xf32>, vector<8x8xf32> -> vector<8x8xf32>
    %cst_107 = arith.constant 0.353553385 : f32
    %219 = vector.broadcast %cst_107 : f32 to vector<8x8xf32>
    %220 = arith.mulf %218, %219 : vector<8x8xf32>
    %cst_108 = arith.constant dense<0xFF800000> : vector<8xf32>
    %221 = vector.multi_reduction <maximumf>, %220, %cst_108 [1] : vector<8x8xf32> to vector<8xf32>
    %222 = vector.shape_cast %221 : vector<8xf32> to vector<8x1xf32>
    %223 = vector.broadcast %222 : vector<8x1xf32> to vector<8x8xf32>
    %224 = arith.subf %220, %223 : vector<8x8xf32>
    %225 = math.exp %224 : vector<8x8xf32>
    %cst_109 = arith.constant dense<0.000000e+00> : vector<8xf32>
    %226 = vector.multi_reduction <add>, %225, %cst_109 [1] : vector<8x8xf32> to vector<8xf32>
    %227 = vector.shape_cast %226 : vector<8xf32> to vector<8x1xf32>
    %228 = tpu.reciprocal %227 {approx = true} : vector<8x1xf32> -> vector<8x1xf32>
    %229 = vector.broadcast %228 : vector<8x1xf32> to vector<8x8xf32>
    %230 = arith.mulf %225, %229 : vector<8x8xf32>
    %cst_110 = arith.constant dense<0.000000e+00> : vector<8x8xf32>
    %231 = tpu.matmul %230, %217, %cst_110 {dimension_numbers = #tpu.dot_dimension_numbers<[1], [0], [0], [1], [0, 0, 1, 1], [], []>} : vector<8x8xf32>, vector<8x8xf32>, vector<8x8xf32> -> vector<8x8xf32>
    %c0_111 = arith.constant 0 : index
    %c16_112 = arith.constant 16 : index
    %232 = vector.load %arg20[%c0_111, %c16_112] : memref<8x32xf32, #tpu.memory_space<vmem>>, vector<8x8xf32>
    tpu.vector_store %arg20[%c0_111, %c16_112], %231 {strides = array<i32>} : memref<8x32xf32, #tpu.memory_space<vmem>>, vector<8x8xf32>,
    %233 = vector.extract_strided_slice %176 {offsets = [0, 24], sizes = [8, 8], strides = [1, 1]} : vector<8x32xf32> to vector<8x8xf32>
    %234 = vector.extract_strided_slice %177 {offsets = [0, 24], sizes = [8, 8], strides = [1, 1]} : vector<8x32xf32> to vector<8x8xf32>
    %235 = vector.extract_strided_slice %178 {offsets = [0, 24], sizes = [8, 8], strides = [1, 1]} : vector<8x32xf32> to vector<8x8xf32>
    %cst_113 = arith.constant dense<0.000000e+00> : vector<8x8xf32>
    %236 = tpu.matmul %233, %234, %cst_113 {dimension_numbers = #tpu.dot_dimension_numbers<[1], [1], [0], [0], [0, 0, 1, 0], [], []>} : vector<8x8xf32>, vector<8x8xf32>, vector<8x8xf32> -> vector<8x8xf32>
    %cst_114 = arith.constant 0.353553385 : f32
    %237 = vector.broadcast %cst_114 : f32 to vector<8x8xf32>
    %238 = arith.mulf %236, %237 : vector<8x8xf32>
    %cst_115 = arith.constant dense<0xFF800000> : vector<8xf32>
    %239 = vector.multi_reduction <maximumf>, %238, %cst_115 [1] : vector<8x8xf32> to vector<8xf32>
    %240 = vector.shape_cast %239 : vector<8xf32> to vector<8x1xf32>
    %241 = vector.broadcast %240 : vector<8x1xf32> to vector<8x8xf32>
    %242 = arith.subf %238, %241 : vector<8x8xf32>
    %243 = math.exp %242 : vector<8x8xf32>
    %cst_116 = arith.constant dense<0.000000e+00> : vector<8xf32>
    %244 = vector.multi_reduction <add>, %243, %cst_116 [1] : vector<8x8xf32> to vector<8xf32>
    %245 = vector.shape_cast %244 : vector<8xf32> to vector<8x1xf32>
    %246 = tpu.reciprocal %245 {approx = true} : vector<8x1xf32> -> vector<8x1xf32>
    %247 = vector.broadcast %246 : vector<8x1xf32> to vector<8x8xf32>
    %248 = arith.mulf %243, %247 : vector<8x8xf32>
    %cst_117 = arith.constant dense<0.000000e+00> : vector<8x8xf32>
    %249 = tpu.matmul %248, %235, %cst_117 {dimension_numbers = #tpu.dot_dimension_numbers<[1], [0], [0], [1], [0, 0, 1, 1], [], []>} : vector<8x8xf32>, vector<8x8xf32>, vector<8x8xf32> -> vector<8x8xf32>
    %c0_118 = arith.constant 0 : index
    %c24_119 = arith.constant 24 : index
    %250 = vector.load %arg20[%c0_118, %c24_119] : memref<8x32xf32, #tpu.memory_space<vmem>>, vector<8x8xf32>
    tpu.vector_store %arg20[%c0_118, %c24_119], %249 {strides = array<i32>} : memref<8x32xf32, #tpu.memory_space<vmem>>, vector<8x8xf32>,
    %c0_120 = arith.constant 0 : index
    %c0_121 = arith.constant 0 : index
    %251 = vector.load %arg20[%c0_120, %c0_121] : memref<8x32xf32, #tpu.memory_space<vmem>>, vector<8x32xf32>
    %c1_122 = arith.constant 1 : index
    %c0_123 = arith.constant 0 : index
    %c0_124 = arith.constant 0 : index
    %252 = vector.load %arg7[%c1_122, %c0_123, %c0_124] : memref<2x32x32xf32, #tpu.memory_space<vmem>>, vector<1x32x32xf32>
    %253 = vector.shape_cast %252 : vector<1x32x32xf32> to vector<32x32xf32>
    %cst_125 = arith.constant dense<0.000000e+00> : vector<8x32xf32>
    %254 = tpu.matmul %251, %253, %cst_125 {dimension_numbers = #tpu.dot_dimension_numbers<[1], [0], [0], [1], [0, 0, 1, 1], [], []>} : vector<8x32xf32>, vector<32x32xf32>, vector<8x32xf32> -> vector<8x32xf32>
    %c1_126 = arith.constant 1 : index
    %c0_127 = arith.constant 0 : index
    %c0_128 = arith.constant 0 : index
    %255 = vector.load %arg8[%c1_126, %c0_127, %c0_128] : memref<2x1x32xf32, #tpu.memory_space<vmem>>, vector<1x1x32xf32>
    %256 = vector.shape_cast %255 : vector<1x1x32xf32> to vector<1x32xf32>
    %257 = vector.broadcast %256 : vector<1x32xf32> to vector<8x32xf32>
    %258 = arith.addf %254, %257 : vector<8x32xf32>
    %259 = arith.addf %168, %258 : vector<8x32xf32>
    %c1_129 = arith.constant 1 : index
    %c0_130 = arith.constant 0 : index
    %c0_131 = arith.constant 0 : index
    %260 = vector.load %arg9[%c1_129, %c0_130, %c0_131] : memref<2x1x32xf32, #tpu.memory_space<vmem>>, vector<1x1x32xf32>
    %261 = vector.shape_cast %260 : vector<1x1x32xf32> to vector<1x32xf32>
    %c1_132 = arith.constant 1 : index
    %c0_133 = arith.constant 0 : index
    %c0_134 = arith.constant 0 : index
    %262 = vector.load %arg10[%c1_132, %c0_133, %c0_134] : memref<2x1x32xf32, #tpu.memory_space<vmem>>, vector<1x1x32xf32>
    %263 = vector.shape_cast %262 : vector<1x1x32xf32> to vector<1x32xf32>
    %cst_135 = arith.constant dense<0.000000e+00> : vector<8xf32>
    %264 = vector.multi_reduction <add>, %259, %cst_135 [1] : vector<8x32xf32> to vector<8xf32>
    %265 = vector.shape_cast %264 : vector<8xf32> to vector<8x1xf32>
    %cst_136 = arith.constant 3.200000e+01 : f32
    %266 = vector.broadcast %cst_136 : f32 to vector<8x1xf32>
    %267 = arith.divf %265, %266 : vector<8x1xf32>
    %268 = vector.broadcast %267 : vector<8x1xf32> to vector<8x32xf32>
    %269 = arith.subf %259, %268 : vector<8x32xf32>
    %270 = arith.mulf %269, %269 : vector<8x32xf32>
    %cst_137 = arith.constant dense<0.000000e+00> : vector<8xf32>
    %271 = vector.multi_reduction <add>, %270, %cst_137 [1] : vector<8x32xf32> to vector<8xf32>
    %272 = vector.shape_cast %271 : vector<8xf32> to vector<8x1xf32>
    %cst_138 = arith.constant 3.200000e+01 : f32
    %273 = vector.broadcast %cst_138 : f32 to vector<8x1xf32>
    %274 = arith.divf %272, %273 : vector<8x1xf32>
    %275 = vector.broadcast %267 : vector<8x1xf32> to vector<8x32xf32>
    %276 = arith.subf %259, %275 : vector<8x32xf32>
    %cst_139 = arith.constant 9.99999974E-6 : f32
    %277 = vector.broadcast %cst_139 : f32 to vector<8x1xf32>
    %278 = arith.addf %274, %277 : vector<8x1xf32>
    %279 = math.rsqrt %278 : vector<8x1xf32>
    %280 = vector.broadcast %279 : vector<8x1xf32> to vector<8x32xf32>
    %281 = arith.mulf %276, %280 : vector<8x32xf32>
    %282 = vector.broadcast %261 : vector<1x32xf32> to vector<8x32xf32>
    %283 = arith.mulf %281, %282 : vector<8x32xf32>
    %284 = vector.broadcast %263 : vector<1x32xf32> to vector<8x32xf32>
    %285 = arith.addf %283, %284 : vector<8x32xf32>
    %c1_140 = arith.constant 1 : index
    %c0_141 = arith.constant 0 : index
    %c0_142 = arith.constant 0 : index
    %286 = vector.load %arg11[%c1_140, %c0_141, %c0_142] : memref<2x32x64xf32, #tpu.memory_space<vmem>>, vector<1x32x64xf32>
    %287 = vector.shape_cast %286 : vector<1x32x64xf32> to vector<32x64xf32>
    %cst_143 = arith.constant dense<0.000000e+00> : vector<8x64xf32>
    %288 = tpu.matmul %285, %287, %cst_143 {dimension_numbers = #tpu.dot_dimension_numbers<[1], [0], [0], [1], [0, 0, 1, 1], [], []>} : vector<8x32xf32>, vector<32x64xf32>, vector<8x64xf32> -> vector<8x64xf32>
    %c1_144 = arith.constant 1 : index
    %c0_145 = arith.constant 0 : index
    %c0_146 = arith.constant 0 : index
    %289 = vector.load %arg12[%c1_144, %c0_145, %c0_146] : memref<2x1x64xf32, #tpu.memory_space<vmem>>, vector<1x1x64xf32>
    %290 = vector.shape_cast %289 : vector<1x1x64xf32> to vector<1x64xf32>
    %291 = vector.broadcast %290 : vector<1x64xf32> to vector<8x64xf32>
    %292 = arith.addf %288, %291 : vector<8x64xf32>
    %cst_147 = arith.constant 0.000000e+00 : f32
    %293 = vector.broadcast %cst_147 : f32 to vector<8x64xf32>
    %294 = arith.maximumf %292, %293 : vector<8x64xf32>
    %c1_148 = arith.constant 1 : index
    %c0_149 = arith.constant 0 : index
    %c0_150 = arith.constant 0 : index
    %295 = vector.load %arg13[%c1_148, %c0_149, %c0_150] : memref<2x64x32xf32, #tpu.memory_space<vmem>>, vector<1x64x32xf32>
    %296 = vector.shape_cast %295 : vector<1x64x32xf32> to vector<64x32xf32>
    %cst_151 = arith.constant dense<0.000000e+00> : vector<8x32xf32>
    %297 = tpu.matmul %294, %296, %cst_151 {dimension_numbers = #tpu.dot_dimension_numbers<[1], [0], [0], [1], [0, 0, 1, 1], [], []>} : vector<8x64xf32>, vector<64x32xf32>, vector<8x32xf32> -> vector<8x32xf32>
    %c1_152 = arith.constant 1 : index
    %c0_153 = arith.constant 0 : index
    %c0_154 = arith.constant 0 : index
    %298 = vector.load %arg14[%c1_152, %c0_153, %c0_154] : memref<2x1x32xf32, #tpu.memory_space<vmem>>, vector<1x1x32xf32>
    %299 = vector.shape_cast %298 : vector<1x1x32xf32> to vector<1x32xf32>
    %300 = vector.broadcast %299 : vector<1x32xf32> to vector<8x32xf32>
    %301 = arith.addf %297, %300 : vector<8x32xf32>
    %302 = arith.addf %285, %301 : vector<8x32xf32>
    %c1_155 = arith.constant 1 : index
    %c0_156 = arith.constant 0 : index
    %c0_157 = arith.constant 0 : index
    %303 = vector.load %arg15[%c1_155, %c0_156, %c0_157] : memref<2x1x32xf32, #tpu.memory_space<vmem>>, vector<1x1x32xf32>
    %304 = vector.shape_cast %303 : vector<1x1x32xf32> to vector<1x32xf32>
    %c1_158 = arith.constant 1 : index
    %c0_159 = arith.constant 0 : index
    %c0_160 = arith.constant 0 : index
    %305 = vector.load %arg16[%c1_158, %c0_159, %c0_160] : memref<2x1x32xf32, #tpu.memory_space<vmem>>, vector<1x1x32xf32>
    %306 = vector.shape_cast %305 : vector<1x1x32xf32> to vector<1x32xf32>
    %cst_161 = arith.constant dense<0.000000e+00> : vector<8xf32>
    %307 = vector.multi_reduction <add>, %302, %cst_161 [1] : vector<8x32xf32> to vector<8xf32>
    %308 = vector.shape_cast %307 : vector<8xf32> to vector<8x1xf32>
    %cst_162 = arith.constant 3.200000e+01 : f32
    %309 = vector.broadcast %cst_162 : f32 to vector<8x1xf32>
    %310 = arith.divf %308, %309 : vector<8x1xf32>
    %311 = vector.broadcast %310 : vector<8x1xf32> to vector<8x32xf32>
    %312 = arith.subf %302, %311 : vector<8x32xf32>
    %313 = arith.mulf %312, %312 : vector<8x32xf32>
    %cst_163 = arith.constant dense<0.000000e+00> : vector<8xf32>
    %314 = vector.multi_reduction <add>, %313, %cst_163 [1] : vector<8x32xf32> to vector<8xf32>
    %315 = vector.shape_cast %314 : vector<8xf32> to vector<8x1xf32>
    %cst_164 = arith.constant 3.200000e+01 : f32
    %316 = vector.broadcast %cst_164 : f32 to vector<8x1xf32>
    %317 = arith.divf %315, %316 : vector<8x1xf32>
    %318 = vector.broadcast %310 : vector<8x1xf32> to vector<8x32xf32>
    %319 = arith.subf %302, %318 : vector<8x32xf32>
    %cst_165 = arith.constant 9.99999974E-6 : f32
    %320 = vector.broadcast %cst_165 : f32 to vector<8x1xf32>
    %321 = arith.addf %317, %320 : vector<8x1xf32>
    %322 = math.rsqrt %321 : vector<8x1xf32>
    %323 = vector.broadcast %322 : vector<8x1xf32> to vector<8x32xf32>
    %324 = arith.mulf %319, %323 : vector<8x32xf32>
    %325 = vector.broadcast %304 : vector<1x32xf32> to vector<8x32xf32>
    %326 = arith.mulf %324, %325 : vector<8x32xf32>
    %327 = vector.broadcast %306 : vector<1x32xf32> to vector<8x32xf32>
    %328 = arith.addf %326, %327 : vector<8x32xf32>
    %329 = vector.extract_strided_slice %328 {offsets = [7, 0], sizes = [1, 32], strides = [1, 1]} : vector<8x32xf32> to vector<1x32xf32>
    %c0_166 = arith.constant 0 : index
    %c0_167 = arith.constant 0 : index
    %330 = vector.load %arg17[%c0_166, %c0_167] : memref<32x128xf32, #tpu.memory_space<vmem>>, vector<32x128xf32>
    %cst_168 = arith.constant dense<0.000000e+00> : vector<1x128xf32>
    %331 = tpu.matmul %329, %330, %cst_168 {dimension_numbers = #tpu.dot_dimension_numbers<[1], [0], [0], [1], [0, 0, 1, 1], [], []>} : vector<1x32xf32>, vector<32x128xf32>, vector<1x128xf32> -> vector<1x128xf32>
    %c0_169 = arith.constant 0 : index
    %c0_170 = arith.constant 0 : index
    %332 = vector.load %arg18[%c0_169, %c0_170] : memref<1x128xf32, #tpu.memory_space<vmem>>, vector<1x128xf32>
    %333 = arith.addf %331, %332 : vector<1x128xf32>
    %334 = tpu.iota {dimensions = array<i32: 1>} : vector<1x128xi32>
    %c6_i32 = arith.constant 6 : i32
    %335 = vector.broadcast %c6_i32 : i32 to vector<1x128xi32>
    %336 = arith.cmpi sge, %334, %335 : vector<1x128xi32>
    %c12_i32 = arith.constant 12 : i32
    %337 = vector.broadcast %c12_i32 : i32 to vector<1x128xi32>
    %338 = arith.cmpi slt, %334, %337 : vector<1x128xi32>
    %339 = arith.andi %336, %338 : vector<1x128xi1>
    %340 = math.exp %333 : vector<1x128xf32>
    %341 = arith.select %339, %340, %333 : vector<1x128xi1>, vector<1x128xf32>
    %342 = vector.shape_cast %341 : vector<1x128xf32> to vector<1x1x128xf32>
    %c0_171 = arith.constant 0 : index
    %c0_172 = arith.constant 0 : index
    %c0_173 = arith.constant 0 : index
    %343 = vector.load %arg19[%c0_171, %c0_172, %c0_173] : memref<1x1x128xf32, #tpu.memory_space<vmem>>, vector<1x1x128xf32>
    tpu.vector_store %arg19[%c0_171, %c0_172, %c0_173], %342 {strides = array<i32>} : memref<1x1x128xf32, #tpu.memory_space<vmem>>, vector<1x1x128xf32>,
    return
  }
  func.func @transform_0(%arg0: i32) -> (i32, i32, i32) {
    %c0_i32 = arith.constant 0 : i32
    %c0_i32_0 = arith.constant 0 : i32
    %c0_i32_1 = arith.constant 0 : i32
    return %arg0, %c0_i32, %c0_i32_0 : i32, i32, i32
  }
  func.func @transform_1(%arg0: i32) -> (i32, i32) {
    %c0_i32 = arith.constant 0 : i32
    %c0_i32_0 = arith.constant 0 : i32
    %c0_i32_1 = arith.constant 0 : i32
    return %c0_i32, %c0_i32_0 : i32, i32
  }
  func.func @transform_2(%arg0: i32) -> (i32, i32) {
    %c0_i32 = arith.constant 0 : i32
    %c0_i32_0 = arith.constant 0 : i32
    %c0_i32_1 = arith.constant 0 : i32
    return %c0_i32, %c0_i32_0 : i32, i32
  }
  func.func @transform_3(%arg0: i32) -> (i32, i32) {
    %c0_i32 = arith.constant 0 : i32
    %c0_i32_0 = arith.constant 0 : i32
    %c0_i32_1 = arith.constant 0 : i32
    return %c0_i32, %c0_i32_0 : i32, i32
  }
  func.func @transform_4(%arg0: i32) -> (i32, i32, i32) {
    %c0_i32 = arith.constant 0 : i32
    %c0_i32_0 = arith.constant 0 : i32
    %c0_i32_1 = arith.constant 0 : i32
    %c0_i32_2 = arith.constant 0 : i32
    return %c0_i32, %c0_i32_0, %c0_i32_1 : i32, i32, i32
  }
  func.func @transform_5(%arg0: i32) -> (i32, i32, i32) {
    %c0_i32 = arith.constant 0 : i32
    %c0_i32_0 = arith.constant 0 : i32
    %c0_i32_1 = arith.constant 0 : i32
    %c0_i32_2 = arith.constant 0 : i32
    return %c0_i32, %c0_i32_0, %c0_i32_1 : i32, i32, i32
  }
  func.func @transform_6(%arg0: i32) -> (i32, i32, i32) {
    %c0_i32 = arith.constant 0 : i32
    %c0_i32_0 = arith.constant 0 : i32
    %c0_i32_1 = arith.constant 0 : i32
    %c0_i32_2 = arith.constant 0 : i32
    return %c0_i32, %c0_i32_0, %c0_i32_1 : i32, i32, i32
  }
  func.func @transform_7(%arg0: i32) -> (i32, i32, i32) {
    %c0_i32 = arith.constant 0 : i32
    %c0_i32_0 = arith.constant 0 : i32
    %c0_i32_1 = arith.constant 0 : i32
    %c0_i32_2 = arith.constant 0 : i32
    return %c0_i32, %c0_i32_0, %c0_i32_1 : i32, i32, i32
  }
  func.func @transform_8(%arg0: i32) -> (i32, i32, i32) {
    %c0_i32 = arith.constant 0 : i32
    %c0_i32_0 = arith.constant 0 : i32
    %c0_i32_1 = arith.constant 0 : i32
    %c0_i32_2 = arith.constant 0 : i32
    return %c0_i32, %c0_i32_0, %c0_i32_1 : i32, i32, i32
  }
  func.func @transform_9(%arg0: i32) -> (i32, i32, i32) {
    %c0_i32 = arith.constant 0 : i32
    %c0_i32_0 = arith.constant 0 : i32
    %c0_i32_1 = arith.constant 0 : i32
    %c0_i32_2 = arith.constant 0 : i32
    return %c0_i32, %c0_i32_0, %c0_i32_1 : i32, i32, i32
  }
  func.func @transform_10(%arg0: i32) -> (i32, i32, i32) {
    %c0_i32 = arith.constant 0 : i32
    %c0_i32_0 = arith.constant 0 : i32
    %c0_i32_1 = arith.constant 0 : i32
    %c0_i32_2 = arith.constant 0 : i32
    return %c0_i32, %c0_i32_0, %c0_i32_1 : i32, i32, i32
  }
  func.func @transform_11(%arg0: i32) -> (i32, i32, i32) {
    %c0_i32 = arith.constant 0 : i32
    %c0_i32_0 = arith.constant 0 : i32
    %c0_i32_1 = arith.constant 0 : i32
    %c0_i32_2 = arith.constant 0 : i32
    return %c0_i32, %c0_i32_0, %c0_i32_1 : i32, i32, i32
  }
  func.func @transform_12(%arg0: i32) -> (i32, i32, i32) {
    %c0_i32 = arith.constant 0 : i32
    %c0_i32_0 = arith.constant 0 : i32
    %c0_i32_1 = arith.constant 0 : i32
    %c0_i32_2 = arith.constant 0 : i32
    return %c0_i32, %c0_i32_0, %c0_i32_1 : i32, i32, i32
  }
  func.func @transform_13(%arg0: i32) -> (i32, i32, i32) {
    %c0_i32 = arith.constant 0 : i32
    %c0_i32_0 = arith.constant 0 : i32
    %c0_i32_1 = arith.constant 0 : i32
    %c0_i32_2 = arith.constant 0 : i32
    return %c0_i32, %c0_i32_0, %c0_i32_1 : i32, i32, i32
  }
  func.func @transform_14(%arg0: i32) -> (i32, i32, i32) {
    %c0_i32 = arith.constant 0 : i32
    %c0_i32_0 = arith.constant 0 : i32
    %c0_i32_1 = arith.constant 0 : i32
    %c0_i32_2 = arith.constant 0 : i32
    return %c0_i32, %c0_i32_0, %c0_i32_1 : i32, i32, i32
  }
  func.func @transform_15(%arg0: i32) -> (i32, i32, i32) {
    %c0_i32 = arith.constant 0 : i32
    %c0_i32_0 = arith.constant 0 : i32
    %c0_i32_1 = arith.constant 0 : i32
    %c0_i32_2 = arith.constant 0 : i32
    return %c0_i32, %c0_i32_0, %c0_i32_1 : i32, i32, i32
  }
  func.func @transform_16(%arg0: i32) -> (i32, i32) {
    %c0_i32 = arith.constant 0 : i32
    %c0_i32_0 = arith.constant 0 : i32
    %c0_i32_1 = arith.constant 0 : i32
    return %c0_i32, %c0_i32_0 : i32, i32
  }
  func.func @transform_17(%arg0: i32) -> (i32, i32) {
    %c0_i32 = arith.constant 0 : i32
    %c0_i32_0 = arith.constant 0 : i32
    %c0_i32_1 = arith.constant 0 : i32
    return %c0_i32, %c0_i32_0 : i32, i32
  }
  func.func @transform_18(%arg0: i32) -> (i32, i32, i32) {
    %c0_i32 = arith.constant 0 : i32
    %c0_i32_0 = arith.constant 0 : i32
    %c0_i32_1 = arith.constant 0 : i32
    return %arg0, %c0_i32, %c0_i32_0 : i32, i32, i32
  }
}

</mosaic_0001>

<bundles_post_ra>
// kernel: continuous_action_transformer_forward.1
= control target key start
LH: loop header
LB: loop body
LE: loop exit
PB: predicated region body
PF: predicated region fallthrough
CT: control target
= control target key end

     0   :  { %s4432_s0 = inlined_call_operand.vmem [shape: f32[2,8,6], index: 0, kind: input, shape index: {}]   ;;  %s4433_s1 = inlined_call_operand.vmem [shape: f32[8,32], index: 1, kind: input, shape index: {}]   ;;  %s4434_s2 = inlined_call_operand.vmem [shape: f32[6,32], index: 2, kind: input, shape index: {}]   ;;  %s4435_s3 = inlined_call_operand.hbm [shape: f32[1,32], index: 3, kind: input, shape index: {}]   ;;  %s4436_s4 = inlined_call_operand.vmem [shape: f32[2,32,96], index: 4, kind: input, shape index: {}]   ;;  %s4437_s5 = inlined_call_operand.vmem [shape: f32[2,1,96], index: 5, kind: input, shape index: {}]   ;;  %s4438_s6 = inlined_call_operand.vmem [shape: f32[2,32,32], index: 6, kind: input, shape index: {}]   ;;  %s4439_s7 = inlined_call_operand.vmem [shape: f32[2,1,32], index: 7, kind: input, shape index: {}]   ;;  %s4440_s8 = inlined_call_operand.vmem [shape: f32[2,1,32], index: 8, kind: input, shape index: {}]   ;;  %s4441_s9 = inlined_call_operand.vmem [shape: f32[2,1,32], index: 9, kind: input, shape index: {}]   ;;  %s4442_s10 = inlined_call_operand.vmem [shape: f32[2,32,64], index: 10, kind: input, shape index: {}]   ;;  %s4443_s11 = inlined_call_operand.vmem [shape: f32[2,1,64], index: 11, kind: input, shape index: {}]   ;;  %s4444_s12 = inlined_call_operand.vmem [shape: f32[2,64,32], index: 12, kind: input, shape index: {}]   ;;  %s4445_s13 = inlined_call_operand.vmem [shape: f32[2,1,32], index: 13, kind: input, shape index: {}]   ;;  %s4446_s14 = inlined_call_operand.hbm [shape: f32[2,1,32], index: 14, kind: input, shape index: {}]   ;;  %s4447_s15 = inlined_call_operand.hbm [shape: f32[2,1,32], index: 15, kind: input, shape index: {}]   ;;  %s4448_s16 = inlined_call_operand.vmem [shape: f32[32,128], index: 16, kind: input, shape index: {}]   ;;  %s4449_s17 = inlined_call_operand.hbm [shape: f32[1,128], index: 17, kind: input, shape index: {}]   ;;  %s4450_s18 = inlined_call_operand.vmem [shape: f32[2,1,128], index: 18, kind: output, shape index: {}]  }
   0x1   :  { %4463 = sst [smem:[#allocation14_spill]] %s4432_s0 }
   0x2   :  { %4464 = sst [smem:[#allocation15_spill]] %s4433_s1 }
   0x3   :  { %4465 = sst [smem:[#allocation16_spill]] %s4434_s2 }
   0x4   :  { %4466 = sst [smem:[#allocation17_spill]] %s4443_s11 }
   0x5   :  { %4467 = sst [smem:[#allocation18_spill]] %s4445_s13 }
   0x6   :  { %4468 = sst [smem:[#allocation19_spill]] %s4448_s16 }
   0x7   :  { %4469 = sst [smem:[#allocation20_spill]] %s4450_s18 }
   0x8   :  { %23 = vsyncpa [#allocation4], 0 }
   0x9   :  { %24 = vsyncpa [#allocation6], 0 }
   0xa   :  { %25 = vsyncpa [#allocation9], 0  ;;  %s3877_s27 = smov 0  }
   0xb LB: > { %4470 = sst [smem:[#allocation13_spill]] %s3757_s27  ;;  %s3759_s28 = smov [#allocation5]   ;;  %s3757_s27 = sphi %s3877_s27, %s31_s27  }
   0xc   : > { %s504_s29 = sshll.u32 %s3759_s28, 4  ;;  %s3883_s30 = sadd.s32 4294967295, %s3757_s27   ;;  %s3888_s29 = int_to_ptr.vmem [resolvable:$true] %s504_s29 }
   0xd   : > { %p3072_p0 = scmp.ge.s32.totalorder %s3757_s27, 1  ;;  %p445_p1 = scmp.lt.s32.totalorder %s3757_s27, 3 }
   0xe   : > { %p4455_p2 = scmp.eq.s32.totalorder %s3883_s30, 0  ;;  %s3760_s19 = smov [#allocation3]  }
   0xf   : > { %p3890_p3 = pnand %p3072_p0, %p445_p1  ;;  %s464_s1 = sshll.u32 %s3760_s19, 4  ;;  %s3896_s1 = int_to_ptr.vmem [resolvable:$true] %s464_s1 }
  0x10   : > { %s3761_s21 = smov [#allocation7]   ;;  %s3762_s2 = smov [#allocation8]  }
  0x11   : > { %s4471_s0 = scalar_select %p3890_p3, 1, 0 }
  0x12   : > { %p3533_p4 = pneg %p3890_p3  ;;  %s517_s22 = sshll.u32 %s3761_s21, 4  ;;  %s3904_s22 = int_to_ptr.vmem [resolvable:$true] %s517_s22 }
  0x13   : > { %s3906_s23 = sshll.u32 %s3762_s2, 4  ;;  %s3627_s26 = scalar_lea.hbm %s4446_s14, 32  ;;  %s535_s23 = int_to_ptr.vmem [resolvable:$true] %s3906_s23 }
  0x14   : > { %p3900_p5 = pnand %p4455_p2, %p3533_p4  ;;  %p3628_p6 = scmp.ne.s32.totalorder %s4446_s14, %s3627_s26 }
  0x15   : > { %p3634_p10 = scmp.lt.u32.totalorder %s3627_s26, %s4446_s14 }
  0x16   : > { %p3916_p7 = pneg %p3900_p5 }
  0x18   : > { %p3630_p8 = pnand %p3916_p7, %p3628_p6 }
  0x1a   : > { %p3631_p9 = pneg %p3630_p8 }
  0x1c   : > { %p3636_p11 = pnand %p3634_p10, %p3631_p9 }
  0x1e   : > { %3639 = shalt.err (!%p3636_p11)
}
  0x1f   : > { %s3640_s24 = scalar_lea.vmem %s3888_s29, 32  ;;  %p3648_p1 = scmp.lt.s32.totalorder %s3888_s29, %s3888_s29 }
  0x20   : > { %p3641_p12 = scmp.ne.s32.totalorder %s3888_s29, %s3640_s24  ;;  %p3649_p4 = scmp.lt.s32.totalorder %s3640_s24, %s3640_s24 }
  0x22   : > { %p3643_p13 = pnand %p3641_p12, %p3916_p7  ;;  %p3650_p6 = por %p3649_p4, %p3648_p1 }
  0x24   : > { %p3644_p0 = pneg %p3643_p13 }
  0x26   : > { %p3651_p8 = pnand %p3650_p6, %p3644_p0 }
  0x28   : > { %3654 = shalt.err (!%p3651_p8)
}
  0x29   : > { %s3763_s25 = smov 16   ;;  %s3764_s26 = smov 1  }
  0x2a   : > { %3539 = dma.hbm_to_vmem [thread:$0]  (!%p3900_p5), %s4446_s14, 32, %s3888_s29, [#allocation6], %s3763_s25, %s3763_s25, %s3764_s26  }
  0x2b   : > { %s3655_s24 = scalar_lea.hbm %s4435_s3, 16 }
  0x2c   : > { %p3656_p9 = scmp.ne.s32.totalorder %s4435_s3, %s3655_s24  ;;  %p3662_p12 = scmp.lt.u32.totalorder %s3655_s24, %s4435_s3 }
  0x2e   : > { %p3658_p10 = pnand %p3656_p9, %p3916_p7 }
  0x30   : > { %p3659_p11 = pneg %p3658_p10 }
  0x32   : > { %p3664_p13 = pnand %p3662_p12, %p3659_p11 }
  0x34   : > { %3667 = shalt.err (!%p3664_p13)
}
  0x35   : > { %s3668_s29 = scalar_lea.vmem %s3896_s1, 16  ;;  %s3675_s16 = scalar_lea.vmem %s3896_s1, 32 }
  0x36   : > { %p3669_p0 = scmp.ne.s32.totalorder %s3896_s1, %s3668_s29  ;;  %p3676_p6 = scmp.lt.s32.totalorder %s3896_s1, %s3896_s1 }
  0x37   : > { %p3677_p8 = scmp.lt.s32.totalorder %s3675_s16, %s3668_s29 }
  0x38   : > { %p3671_p1 = pnand %p3669_p0, %p3916_p7 }
  0x39   : > { %p3678_p9 = por %p3677_p8, %p3676_p6 }
  0x3a   : > { %p3672_p4 = pneg %p3671_p1 }
  0x3c   : > { %p3679_p10 = pnand %p3678_p9, %p3672_p4 }
  0x3e   : > { %3682 = shalt.err (!%p3679_p10)
}
  0x3f   : > { %3536 = dma.hbm_to_vmem [thread:$0]  (!%p3900_p5), %s4435_s3, 16, %s3896_s1, [#allocation4]  }
  0x40   : > { %s3683_s19 = scalar_lea.hbm %s4447_s15, 32 }
  0x41   : > { %p3684_p11 = scmp.ne.s32.totalorder %s4447_s15, %s3683_s19  ;;  %p3690_p0 = scmp.lt.u32.totalorder %s3683_s19, %s4447_s15 }
  0x43   : > { %p3686_p12 = pnand %p3684_p11, %p3916_p7 }
  0x45   : > { %p3687_p13 = pneg %p3686_p12 }
  0x47   : > { %p3692_p1 = pnand %p3690_p0, %p3687_p13 }
  0x49   : > { %3695 = shalt.err (!%p3692_p1)
}
  0x4a   : > { %s3696_s1 = scalar_lea.vmem %s3904_s22, 32  ;;  %p3704_p9 = scmp.lt.s32.totalorder %s3904_s22, %s3904_s22 }
  0x4b   : > { %p3697_p4 = scmp.ne.s32.totalorder %s3904_s22, %s3696_s1  ;;  %p3705_p10 = scmp.lt.s32.totalorder %s3696_s1, %s3696_s1 }
  0x4d   : > { %p3699_p6 = pnand %p3697_p4, %p3916_p7  ;;  %p3706_p11 = por %p3705_p10, %p3704_p9 }
  0x4f   : > { %p3700_p8 = pneg %p3699_p6 }
  0x51   : > { %p3707_p12 = pnand %p3706_p11, %p3700_p8 }
  0x53   : > { %3710 = shalt.err (!%p3707_p12)
}
  0x54   : > { %3542 = dma.hbm_to_vmem [thread:$0]  (!%p3900_p5), %s4447_s15, 32, %s3904_s22, [#allocation6], %s3763_s25, %s3763_s25, %s3764_s26  }
  0x55   : > { %s3711_s28 = scalar_lea.hbm %s4449_s17, 16 }
  0x56   : > { %p3712_p13 = scmp.ne.s32.totalorder %s4449_s17, %s3711_s28  ;;  %p3718_p4 = scmp.lt.u32.totalorder %s3711_s28, %s4449_s17 }
  0x58   : > { %p3714_p0 = pnand %p3712_p13, %p3916_p7 }
  0x5a   : > { %p3715_p1 = pneg %p3714_p0 }
  0x5c   : > { %p3720_p6 = pnand %p3718_p4, %p3715_p1 }
  0x5e   : > { %3723 = shalt.err (!%p3720_p6)
}
  0x5f   : > { %s3724_s29 = scalar_lea.vmem %s535_s23, 16  ;;  %s3731_s22 = scalar_lea.vmem %s535_s23, 32 }
  0x60   : > { %p3725_p8 = scmp.ne.s32.totalorder %s535_s23, %s3724_s29  ;;  %p3732_p11 = scmp.lt.s32.totalorder %s535_s23, %s535_s23 }
  0x61   : > { %p3733_p12 = scmp.lt.s32.totalorder %s3731_s22, %s3724_s29 }
  0x62   : > { %p3727_p9 = pnand %p3725_p8, %p3916_p7 }
  0x63   : > { %p3734_p2 = por %p3733_p12, %p3732_p11 }
  0x64   : > { %p3728_p10 = pneg %p3727_p9 }
  0x66   : > { %p3735_p3 = pnand %p3734_p2, %p3728_p10 }
  0x68   : > { %3738 = shalt.err (!%p3735_p3)
}
  0x69   : > { %3545 = dma.hbm_to_vmem [thread:$0]  (!%p3900_p5), %s4449_s17, 16, %s535_s23, [#allocation9]  }
  0x6a   : > { %p4474_p13 = scmp.ne.s32.totalorder %s4471_s0, 0 }
  0x6b   : > { %p4475_p0 = scmp.eq.s32.totalorder (!%p4474_p13), %s3883_s30, 0 }
  0x6c   : > { %554 = sbr.rel (%p4474_p13) target bundleno = 6153 (0x1809), region = 92 }
  0x73   : > { %3744 = dma.done.wait (%p4475_p0), [#allocation4], 16   ;;  %p4476_p7 = pmov %p4475_p0 }
  0x74   : > { %p4477_p1 = pmov %p4475_p0 }
  0x75   : > { %3746 = vsyncadd (%p4476_p7), [#allocation4], 4294967280 }
  0x76   : > { %3748 = dma.done.wait (%p4477_p1), [#allocation6], 64   ;;  %p4478_p2 = pmov %p4475_p0 }
  0x77   : > { %p4479_p3 = pmov %p4475_p0 }
  0x78   : > { %3750 = vsyncadd (%p4478_p2), [#allocation6], 4294967232 }
  0x79   : > { %3752 = dma.done.wait (%p4479_p3), [#allocation9], 16   ;;  %p4480_p5 = pmov %p4475_p0 }
  0x7a   : > { %p617_p4 = scmp.lt.s32.totalorder %s3883_s30, 1  ;;  %v3765_v0 = vmov 0.0   ;;  %vm3766_vm0 = vmmov 0   ;;  %v3767_v1 = vmov 0.0|0.0   ;;  %vm637_vm1 = vcmask 1045504   ;;  %s4481_s23 = sld [smem:[#allocation14_spill]] }
  0x7b   : > { %3754 = vsyncadd (%p4480_p5), [#allocation9], 4294967280  ;;  %3251 = vmatprep.subr.mxu0 %v3765_v0  ;;  %3253 = vmatprep.mubr.msk.f32.mxu0 %vm3766_vm0, %v3765_v0  ;;  %vm633_vm2 = vcmask 48128   ;;  %s4482_s13 = sld [smem:[#allocation16_spill]]  ;;  %v713_v4 = vld [vmem:[%s4436_s4] sm:$0xff]  ;;  %v714_v5 = vld [vmem:[%s4436_s4 + $0x8] sm:$0xff] }
  0x7c   : > { %s4496_s30 = smov (!%p617_p4, %s3883_s30), 1  ;;  %3451 = vmatprep.subr.bf16.mxu1 %v3767_v1  ;;  %3264 = vmatprep.mubr.msk.f32.mxu1 %vm3766_vm0, %v3765_v0  ;;  %v3452_v6 = vpack.c.bf16 %v714_v5, %v713_v4  ;;  %v715_v7 = vld [vmem:[%s4436_s4 + $0x10] sm:$0xff]  ;;  %v716_v8 = vld [vmem:[%s4436_s4 + $0x18] sm:$0xff]  ;;  %v3084_v10 = vld [vmem:[#allocation3] ss:$0 sm:$0xff]  ;;  %vm724_vm3 = vcmask 261120  }
  0x7d   : > { %s3083_s27 = sshll.u32 %s4496_s30, 3  ;;  %v3455_v9 = vpack.c.bf16 %v716_v8, %v715_v7  ;;  %v3087_v16 = vld [vmem:[%s4437_s5] ss:$0 sm:$0xff]  ;;  %s3770_s16 = smov 88   ;;  %vm801_vm4 = vcmask 64512   ;;  %vm1135_vm5 = vcmask 130112  }
  0x7e   : > { %3453 = vmatpush3.bf16.msra.mxu1 %v3452_v6  ;;  %s3771_s11 = smov 120   ;;  %s3773_s18 = smov 72   ;;  %vm1307_vm6 = vcmask 195712   ;;  %vm1479_vm7 = vcmask 261312   ;;  %vm1697_vm8 = vcmask 523264  }
  0x7f   : > { %3454 = vmatprep.subr.bf16.mxu1 %v3767_v1  ;;  %s3774_s28 = smov 112   ;;  %s3775_s19 = smov 104  }
  0x80   : > { %s620_s1 = scalar_lea.vmem %s4481_s23, %s3083_s27  ;;  %s4483_s27 = sld [smem:[#allocation15_spill]] }
  0x81   : > { %v625_v2 = vld [vmem:[%s4482_s13] sm:$0x3f]  ;;  %s4462_s23 = smov 64   ;;  %s3772_s13 = smov 80  }
  0x82   : > { %v624_v3 = vld [vmem:[%s620_s1] sm:$0xff]  ;;  %3252 = vmatpush3.msk.msra.mxu0 %vm637_vm1, %v625_v2  ;;  %3456 = vmatpush3.bf16.msra.mxu1 %v3455_v9  ;;  %s3769_s1 = smov 96   ;;  %s3776_s21 = smov 56  }
  0x83   : > { %3254 = vmatmul.mubr.msk.f32.vlgmr.msra.gmra.mrb[0].mxu0 %vm633_vm2, %v624_v3  ;;  %3267 = vmatprep.subr.mxu0 %v3765_v0  ;;  %s4461_s2 = smov 48   ;;  %s4457_s24 = smov 40  }
  0x84   : > { %3269 = vmatprep.mubr.msk.f32.mxu0 %vm3766_vm0, %v3765_v0  ;;  %3287 = vmatprep.subr.mxu1 %v3765_v0  ;;  %s4460_s29 = smov 8   ;;  %s4459_s22 = smov 16  }
  0x85   : > { %s4491_s26 = smov 24   ;;  %s4493_s25 = sld [smem:[#allocation20_spill]] }
  0x86   : > { %v711_v12 = vld [vmem:[%s4483_s27] sm:$0xff] }
 0x156   : > { %v707_v11 = vpop.f32.mrb[0].mxu0 }
 0x157   : > { %v708_v13 = vadd.f32 %v3084_v10, %v707_v11  ;;  %v3255_v14 = vpop.f32.mrb[1].mxu0 }
 0x159   : > { %v4060_v15 = vadd.f32 %v711_v12, %v708_v13 }
 0x15b   : > { %3265 = vmatmul.mubr.msk.f32.vlgmr.msra.gmra.mrb[0].mxu1 %vm724_vm3, %v4060_v15 }
 0x15c   : > { %3289 = vmatprep.mubr.msk.f32.mxu1 %vm3766_vm0, %v3765_v0 }
 0x22e   : > { %v794_v17 = vpop.f32.mrb[0].mxu1 }
 0x22f   : > { %v4069_v18 = vadd.f32 %v3087_v16, %v794_v17  ;;  %v3266_v19 = vpop.f32.mrb[1].mxu1 }
 0x231   : > { %888 = vrot.lane.b32.xlu1 %v4069_v18, %s4462_s23  ;;  %799 = vrot.lane.b32.xlu0 %v4069_v18, %s3769_s1 }
 0x235   : > { %967 = vrot.lane.b32.xlu1 %v4069_v18, %s3770_s16 }
 0x239   : > { %965 = vrot.lane.b32.xlu1 %v4069_v18, %s3771_s11 }
 0x23d   : > { %1139 = vrot.lane.b32.xlu1 %v4069_v18, %s3772_s13 }
 0x2a3   : > { %v889_v20 = vpop.permute.xlu1 %888  ;;  %v800_v21 = vpop.permute.xlu0 %799 }
 0x2a4   : > { %3268 = vmatpush3.xpose.msk.msra.mxu0 %vm801_vm4, %v800_v21  ;;  %v1483_v21 = vld [vmem:[%s4438_s6 + $0x8] sm:$0xff] }
 0x2a5   : > { %3272 = vmatprep.subr.mxu0 %v3765_v0 }
 0x2a7   : > { %v968_v22 = vpop.permute.xlu1 %967  ;;  %3270 = vmatmul.mubr.msk.f32.vlgmr.msra.gmra.mrb[2].mxu0 %vm801_vm4, %v4069_v18 }
 0x2a8   : > { %3273 = vmatpush3.msra.mxu0 %v889_v20  ;;  %3274 = vmatprep.mubr.msk.f32.mxu0 %vm3766_vm0, %v3765_v0  ;;  %v1482_v20 = vld [vmem:[%s4438_s6] sm:$0xff] }
 0x2a9   : > { %3277 = vmatprep.subr.mxu0 %v3765_v0 }
 0x2ab   : > { %v966_v23 = vpop.permute.xlu1 %965 }
 0x2af   : > { %v1140_v24 = vpop.permute.xlu1 %1139 }
 0x2b0   : > { %3288 = vmatpush3.xpose.msk.msra.mxu1 %vm801_vm4, %v1140_v24  ;;  %v1485_v24 = vld [vmem:[%s4438_s6 + $0x18] sm:$0xff] }
 0x2b1   : > { %3297 = vmatprep.subr.mxu1 %v3765_v0 }
 0x37a   : > { %v872_v25 = vpop.f32.mrb[2].mxu0 }
 0x37b   : > { %v876_v26 = vmul.f32 0.35355338, %v872_v25  ;;  %v3271_v27 = vpop.f32.mrb[3].mxu0 }
 0x37d   : > { %v877_v28 = vsel %vm801_vm4, %v876_v26, -inf }
 0x37e   : > { %878 = vmax.xlane.f32.xlu0 %v877_v28 }
 0x394   : > { %1311 = vrot.lane.b32.xlu0 %v4069_v18, %s3773_s18 }
 0x40b   : > { %v879_v29 = vpop.xlane.xlu0 %878 }
 0x40c   : > { %v880_v30 = vsub.f32 %v876_v26, %v879_v29 }
 0x40e   : > { %v881_v31 = vmul.f32 1.442695, %v880_v30 }
 0x40f   : > { %v1312_v36 = vpop.permute.xlu0 %1311 }
 0x410   : > { %3585 = vpow2.f32 %v881_v31 }
 0x41a   : > { %v3586_v32 = vpop.eup %3585 }
 0x41b   : > { %v883_v33 = vsel %vm801_vm4, %v3586_v32, 0.0 }
 0x41c   : > { %884 = vadd.xlane.f32.xlu1 %v883_v33 }
 0x42d   : > { %1137 = vrot.lane.b32.xlu1 %v4069_v18, %s3774_s28 }
 0x431   : > { %1309 = vrot.lane.b32.xlu1 %v4069_v18, %s3775_s19 }
 0x4a9   : > { %v885_v34 = vpop.xlane.xlu1 %884 }
 0x4aa   : > { %3587 = vrcp.f32 %v885_v34 }
 0x4ad   : > { %v1138_v35 = vpop.permute.xlu1 %1137 }
 0x4ae   : > { %3290 = vmatmul.mubr.msk.f32.vlgmr.msra.gmra.mrb[2].mxu1 %vm801_vm4, %v1138_v35 }
 0x4af   : > { %3298 = vmatpush3.xpose.msk.msra.mxu1 %vm801_vm4, %v1312_v36  ;;  %3299 = vmatprep.mubr.msk.f32.mxu1 %vm3766_vm0, %v3765_v0  ;;  %v3101_v36 = vld [vmem:[%s4439_s7] ss:$0 sm:$0xff] }
 0x4b0   : > { %3457 = vmatprep.subr.bf16.mxu1 %v3767_v1 }
 0x4b1   : > { %v1310_v37 = vpop.permute.xlu1 %1309 }
 0x4b2   : > { %3300 = vmatmul.mubr.msk.f32.vlgmr.msra.gmra.mrb[4].mxu1 %vm801_vm4, %v1310_v37 }
 0x4b3   : > { %3315 = vmatprep.mubr.msk.f32.mxu1 %vm3766_vm0, %v3765_v0 }
 0x4b4   : > { %v3588_v38 = vpop.eup %3587 }
 0x4b5   : > { %v887_v39 = vmul.f32 %v3588_v38, %v3586_v32 }
 0x4b7   : > { %3275 = vmatmul.mubr.msk.f32.vlgmr.msra.gmra.mrb[4].mxu0 %vm801_vm4, %v887_v39 }
 0x4b8   : > { %3278 = vmatpush3.xpose.msk.msra.mxu0 %vm801_vm4, %v968_v22  ;;  %3279 = vmatprep.mubr.msk.f32.mxu0 %vm3766_vm0, %v3765_v0  ;;  %v3458_v22 = vpack.c.bf16 %v1483_v21, %v1482_v20 }
 0x4b9   : > { %3282 = vmatprep.subr.mxu0 %v3765_v0 }
 0x4ba   : > { %3459 = vmatpush3.bf16.msra.mxu1 %v3458_v22 }
 0x4bb   : > { %3280 = vmatmul.mubr.msk.f32.vlgmr.msra.gmra.mrb[6].mxu0 %vm801_vm4, %v966_v23  ;;  %v1484_v23 = vld [vmem:[%s4438_s6 + $0x10] sm:$0xff]  ;;  %3460 = vmatprep.subr.bf16.mxu1 %v3767_v1 }
 0x4bc   : > { %3284 = vmatprep.mubr.msk.f32.mxu0 %vm3766_vm0, %v3765_v0  ;;  %v3461_v25 = vpack.c.bf16 %v1485_v24, %v1484_v23 }
 0x4be   : > { %3462 = vmatpush3.bf16.msra.mxu1 %v3461_v25 }
 0x4bf   : > { %3469 = vmatprep.subr.bf16.mxu1 %v3767_v1 }
 0x581   : > { %v1211_v40 = vpop.f32.mrb[2].mxu1 }
 0x582   : > { %v1215_v41 = vmul.f32 0.35355338, %v1211_v40  ;;  %v3291_v42 = vpop.f32.mrb[3].mxu1 }
 0x584   : > { %v1216_v43 = vsel %vm801_vm4, %v1215_v41, -inf }
 0x585   : > { %1217 = vmax.xlane.f32.xlu0 %v1216_v43  ;;  %v1383_v44 = vpop.f32.mrb[4].mxu1 }
 0x586   : > { %v3301_v45 = vpop.f32.mrb[5].mxu1  ;;  %v1387_v51 = vmul.f32 0.35355338, %v1383_v44 }
 0x588   : > { %v1388_v53 = vsel %vm801_vm4, %v1387_v51, -inf }
 0x58a   : > { %v960_v46 = vpop.f32.mrb[4].mxu0 }
 0x58b   : > { %964 = vst.msk [vmem:[#allocation2] sm:$0xff] %vm801_vm4, %v960_v46  ;;  %v3276_v47 = vpop.f32.mrb[5].mxu0 }
 0x58c   : > { %v1597_v47 = vld [vmem:[%s4442_s10] sm:$0xff] }
 0x58e   : > { %v1039_v48 = vpop.f32.mrb[6].mxu0 }
 0x58f   : > { %v1043_v49 = vmul.f32 0.35355338, %v1039_v48  ;;  %v3281_v50 = vpop.f32.mrb[7].mxu0  ;;  %v1598_v48 = vld [vmem:[%s4442_s10 + $0x8] sm:$0xff] }
 0x590   : > { %v1600_v50 = vld [vmem:[%s4442_s10 + $0x18] sm:$0xff] }
 0x591   : > { %v1044_v52 = vsel %vm801_vm4, %v1043_v49, -inf }
 0x592   : > { %1045 = vmax.xlane.f32.xlu1 %v1044_v52  ;;  %v1682_v52 = vld [vmem:[%s4444_s12] sm:$0xff] }
 0x596   : > { %1389 = vmax.xlane.f32.xlu1 %v1388_v53  ;;  %v1683_v53 = vld [vmem:[%s4444_s12 + $0x8] sm:$0xff] }
 0x612   : > { %v1218_v54 = vpop.xlane.xlu0 %1217 }
 0x613   : > { %v1219_v55 = vsub.f32 %v1215_v41, %v1218_v54  ;;  %v1684_v54 = vld [vmem:[%s4444_s12 + $0x10] sm:$0xff] }
 0x615   : > { %v1220_v56 = vmul.f32 1.442695, %v1219_v55  ;;  %v3470_v55 = vpack.c.bf16 %v1683_v53, %v1682_v52 }
 0x617   : > { %3589 = vpow2.f32 %v1220_v56  ;;  %v1685_v56 = vld [vmem:[%s4444_s12 + $0x18] sm:$0xff] }
 0x61f   : > { %v1046_v57 = vpop.xlane.xlu1 %1045 }
 0x620   : > { %v1047_v3 = vsub.f32 %v1043_v49, %v1046_v57  ;;  %v3464_v49 = vpack.c.bf16 %v1598_v48, %v1597_v47  ;;  %v3473_v57 = vpack.c.bf16 %v1685_v56, %v1684_v54 }
 0x621   : > { %v3590_v58 = vpop.eup %3589 }
 0x622   : > { %v1222_v59 = vsel %vm801_vm4, %v3590_v58, 0.0  ;;  %v1048_v4 = vmul.f32 1.442695, %v1047_v3  ;;  %v3103_v3 = vld [vmem:[%s4440_s8] ss:$0 sm:$0xff] }
 0x623   : > { %1223 = vadd.xlane.f32.xlu1 %v1222_v59  ;;  %v1390_v60 = vpop.xlane.xlu1 %1389  ;;  %v1687_v59 = vld [vmem:[%s4444_s12 + $0x28] sm:$0xff] }
 0x624   : > { %v1391_v61 = vsub.f32 %v1387_v51, %v1390_v60 }
 0x626   : > { %v1392_v62 = vmul.f32 1.442695, %v1391_v61 }
 0x628   : > { %3591 = vpow2.f32 %v1392_v62 }
 0x629   : > { %3593 = vpow2.f32 %v1048_v4 }
 0x632   : > { %v3592_v63 = vpop.eup %3591 }
 0x633   : > { %v1394_v2 = vsel %vm801_vm4, %v3592_v63, 0.0  ;;  %v3594_v5 = vpop.eup %3593 }
 0x634   : > { %1055 = vrot.lane.b32.xlu1 %v4069_v18, %s3776_s21  ;;  %1395 = vadd.xlane.f32.xlu0 %v1394_v2  ;;  %v1050_v6 = vsel %vm801_vm4, %v3594_v5, 0.0 }
 0x64a   : > { %1227 = vrot.lane.b32.xlu0 %v4069_v18, %s4461_s2  ;;  %s4490_s2 = smov 16  }
 0x658   : > { %1051 = vadd.xlane.f32.xlu1 %v1050_v6 }
 0x669   : > { %1399 = vrot.lane.b32.xlu1 %v4069_v18, %s4457_s24  ;;  %s4458_s24 = smov 24  }
 0x6b0   : > { %v1224_v7 = vpop.xlane.xlu1 %1223 }
 0x6b4   : > { %v1056_v8 = vpop.permute.xlu1 %1055 }
 0x6b5   : > { %3283 = vmatpush3.msra.mxu0 %v1056_v8  ;;  %v1688_v8 = vld [vmem:[%s4444_s12 + $0x30] sm:$0xff] }
 0x6b6   : > { %3292 = vmatprep.subr.mxu0 %v3765_v0 }
 0x6c1   : > { %v1396_v10 = vpop.xlane.xlu0 %1395 }
 0x6c5   : > { %v1228_v14 = vpop.permute.xlu0 %1227 }
 0x6e5   : > { %v1052_v9 = vpop.xlane.xlu1 %1051 }
 0x6e6   : > { %3595 = vrcp.f32 %v1052_v9  ;;  %v1689_v9 = vld [vmem:[%s4444_s12 + $0x38] sm:$0xff] }
 0x6e7   : > { %3597 = vrcp.f32 %v1224_v7 }
 0x6e8   : > { %3599 = vrcp.f32 %v1396_v10  ;;  %v3479_v10 = vpack.c.bf16 %v1689_v9, %v1688_v8 }
 0x6e9   : > { %v1400_v18 = vpop.permute.xlu1 %1399 }
 0x6f0   : > { %v3596_v11 = vpop.eup %3595 }
 0x6f1   : > { %v1054_v12 = vmul.f32 %v3596_v11, %v3594_v5  ;;  %v3598_v13 = vpop.eup %3597  ;;  %v3104_v5 = vld [vmem:[%s4441_s9] ss:$0 sm:$0xff] }
 0x6f2   : > { %v1226_v16 = vmul.f32 %v3598_v13, %v3590_v58  ;;  %v3600_v17 = vpop.eup %3599  ;;  %v1686_v58 = vld [vmem:[%s4444_s12 + $0x20] sm:$0xff] }
 0x6f3   : > { %3285 = vmatmul.mubr.msk.f32.vlgmr.msra.gmra.mrb[8].mxu0 %vm801_vm4, %v1054_v12  ;;  %v1398_v19 = vmul.f32 %v3600_v17, %v3592_v63  ;;  %v3476_v60 = vpack.c.bf16 %v1687_v59, %v1686_v58 }
 0x6f4   : > { %3293 = vmatpush3.msra.mxu0 %v1228_v14  ;;  %3294 = vmatprep.mubr.msk.f32.mxu0 %vm3766_vm0, %v3765_v0 }
 0x6f5   : > { %3302 = vmatprep.subr.mxu0 %v3765_v0 }
 0x6f7   : > { %3295 = vmatmul.mubr.msk.f32.vlgmr.msra.gmra.mrb[10].mxu0 %vm801_vm4, %v1226_v16 }
 0x6f8   : > { %3303 = vmatpush3.msra.mxu0 %v1400_v18  ;;  %3304 = vmatprep.mubr.msk.f32.mxu0 %vm3766_vm0, %v3765_v0 }
 0x6f9   : > { %3463 = vmatprep.subr.bf16.mxu0 %v3767_v1 }
 0x6fb   : > { %3305 = vmatmul.mubr.msk.f32.vlgmr.msra.gmra.mrb[12].mxu0 %vm801_vm4, %v1398_v19 }
 0x6fc   : > { %3326 = vmatprep.mubr.msk.f32.mxu0 %vm3766_vm0, %v3765_v0  ;;  %3465 = vmatpush3.bf16.msra.mxu0 %v3464_v49 }
 0x6fd   : > { %3466 = vmatprep.subr.bf16.mxu0 %v3767_v1 }
 0x7c6   : > { %v1127_v26 = vpop.f32.mrb[8].mxu0 }
 0x7c7   : > { %1132 = vrot.lane.b32.xlu1 %v1127_v26, %s4460_s29  ;;  %v3286_v27 = vpop.f32.mrb[9].mxu0  ;;  %s4485_s29 = sld [smem:[#allocation18_spill]] }
 0x7ca   : > { %v1299_v28 = vpop.f32.mrb[10].mxu0 }
 0x7cb   : > { %1304 = vrot.lane.b32.xlu0 %v1299_v28, %s4459_s22  ;;  %v3296_v29 = vpop.f32.mrb[11].mxu0  ;;  %v3111_v28 = vld [vmem:[%s4436_s4 + $0x20] sm:$0xff] }
 0x7cc   : > { %v3112_v29 = vld [vmem:[%s4436_s4 + $0x28] sm:$0xff] }
 0x7cd   : > { %v3107_v17 = vld [vmem:[%s4485_s29] ss:$0 sm:$0xff] }
 0x7ce   : > { %v1471_v30 = vpop.f32.mrb[12].mxu0 }
 0x7cf   : > { %1476 = vrot.lane.b32.xlu1 %v1471_v30, %s4458_s24  ;;  %v3306_v31 = vpop.f32.mrb[13].mxu0  ;;  %s4484_s24 = sld [smem:[#allocation17_spill]]  ;;  %v3482_v30 = vpack.c.bf16 %v3112_v29, %v3111_v28 }
 0x7d0   : > { %v3113_v31 = vld [vmem:[%s4436_s4 + $0x30] sm:$0xff] }
 0x7d5   : > { %v3105_v11 = vld [vmem:[%s4484_s24] ss:$0 sm:$0xff] }
 0x839   : > { %v1133_v32 = vpop.permute.xlu1 %1132 }
 0x83a   : > { %1136 = vst.msk [vmem:[#allocation2] sm:$0xff] %vm1135_vm5, %v1133_v32  ;;  %v3114_v32 = vld [vmem:[%s4436_s4 + $0x38] sm:$0xff] }
 0x83d   : > { %v1305_v33 = vpop.permute.xlu0 %1304 }
 0x83e   : > { %1308 = vst.msk [vmem:[#allocation2] sm:$0xff] %vm1307_vm6, %v1305_v33  ;;  %v3485_v33 = vpack.c.bf16 %v3114_v32, %v3113_v31 }
 0x841   : > { %v1477_v34 = vpop.permute.xlu1 %1476 }
 0x842   : > { %1480 = vst.msk [vmem:[#allocation2] sm:$0xff] %vm1479_vm7, %v1477_v34 }
 0x849   : > { %v1481_v35 = vld [vmem:[#allocation2] sm:$0xff] }
 0x84a   : > { %3316 = vmatmul.mubr.msk.f32.vlgmr.msra.gmra.mrb[6].mxu1 %vm724_vm3, %v1481_v35 }
 0x84b   : > { %3345 = vmatprep.mubr.msk.f32.mxu1 %vm3766_vm0, %v3765_v0  ;;  %3471 = vmatpush3.bf16.msra.mxu1 %v3470_v55 }
 0x84c   : > { %3472 = vmatprep.subr.bf16.mxu1 %v3767_v1 }
 0x84f   : > { %3474 = vmatpush3.bf16.msra.mxu1 %v3473_v57 }
 0x850   : > { %3475 = vmatprep.subr.bf16.mxu1 %v3767_v1 }
 0x853   : > { %3477 = vmatpush3.bf16.msra.mxu1 %v3476_v60 }
 0x854   : > { %3478 = vmatprep.subr.bf16.mxu1 %v3767_v1 }
 0x857   : > { %3480 = vmatpush3.bf16.msra.mxu1 %v3479_v10 }
 0x858   : > { %3369 = vmatprep.subr.mxu1 %v3765_v0 }
 0x91d   : > { %v1562_v37 = vpop.f32.mrb[6].mxu1 }
 0x91e   : > { %v1563_v38 = vadd.f32 %v3101_v36, %v1562_v37  ;;  %v3317_v39 = vpop.f32.mrb[7].mxu1 }
 0x920   : > { %v1566_v40 = vadd.f32 %v1563_v38, %v4060_v15  ;;  %v1599_v15 = vld [vmem:[%s4442_s10 + $0x10] sm:$0xff]  ;;  %v3109_v38 = vld [vmem:[#allocation5] ss:$0 sm:$0xff] }
 0x921   : > { %v3467_v51 = vpack.c.bf16 %v1600_v50, %v1599_v15 }
 0x922   : > { %v1569_v41 = vsel %vm724_vm3, %v1566_v40, 0.0 }
 0x923   : > { %1570 = vadd.xlane.f32.xlu0 %v1569_v41  ;;  %3468 = vmatpush3.bf16.msra.mxu0 %v3467_v51 }
 0x924   : > { %3481 = vmatprep.subr.bf16.mxu0 %v3767_v1 }
 0x9b0   : > { %v1571_v42 = vpop.xlane.xlu0 %1570 }
 0x9b1   : > { %v1573_v43 = vmul.f32 0.03125, %v1571_v42 }
 0x9b3   : > { %v1574_v44 = vsub.f32 %v1566_v40, %v1573_v43  ;;  %v3110_v40 = vld [vmem:[#allocation7] ss:$0 sm:$0xff]  ;;  %v3116_v43 = vld [vmem:[%s4437_s5 + $0x1] ss:$0 sm:$0xff] }
 0x9b5   : > { %v1575_v45 = vmul.f32 %v1574_v44, %v1574_v44 }
 0x9b7   : > { %v1576_v46 = vsel %vm724_vm3, %v1575_v45, 0.0 }
 0x9b8   : > { %1577 = vadd.xlane.f32.xlu1 %v1576_v46 }
 0xa45   : > { %v1578_v61 = vpop.xlane.xlu1 %1577 }
 0xa46   : > { %v1579_v62 = vmul.f32 0.03125, %v1578_v61 }
 0xa48   : > { %v1580_v63 = vadd.f32 1e-05, %v1579_v62 }
 0xa4a   : > { %3601 = vrsqrt.f32 %v1580_v63 }
 0xa54   : > { %v3602_v2 = vpop.eup %3601 }
 0xa55   : > { %v1582_v4 = vmul.f32 %v3602_v2, %v1574_v44 }
 0xa57   : > { %v1589_v6 = vmul.f32 %v3103_v3, %v1582_v4 }
 0xa59   : > { %v1596_v7 = vadd.f32 %v3104_v5, %v1589_v6 }
 0xa5b   : > { %3327 = vmatmul.mubr.msk.f32.vlgmr.msra.gmra.mrb[14].mxu0 %vm724_vm3, %v1596_v7 }
 0xa5c   : > { %3356 = vmatprep.mubr.msk.f32.mxu0 %vm3766_vm0, %v3765_v0  ;;  %3483 = vmatpush3.bf16.msra.mxu0 %v3482_v30 }
 0xa5d   : > { %3484 = vmatprep.subr.bf16.mxu0 %v3767_v1 }
 0xa60   : > { %3486 = vmatpush3.bf16.msra.mxu0 %v3485_v33 }
 0xa61   : > { %3359 = vmatprep.subr.mxu0 %v3765_v0 }
 0xb2e   : > { %v1677_v12 = vpop.f32.mrb[14].mxu0 }
 0xb2f   : > { %v1678_v13 = vadd.f32 %v3105_v11, %v1677_v12  ;;  %v3328_v14 = vpop.f32.mrb[15].mxu0 }
 0xb31   : > { %v1681_v16 = vmax.f32 %v1678_v13, 0.0 }
 0xb33   : > { %3346 = vmatmul.mubr.msk.f32.vlgmr.msra.gmra.mrb[8].mxu1 %vm1697_vm8, %v1681_v16 }
 0xb34   : > { %3371 = vmatprep.mubr.msk.f32.mxu1 %vm3766_vm0, %v3765_v0 }
 0xc06   : > { %v1767_v18 = vpop.f32.mrb[8].mxu1 }
 0xc07   : > { %v1768_v19 = vadd.f32 %v3107_v17, %v1767_v18  ;;  %v3347_v20 = vpop.f32.mrb[9].mxu1 }
 0xc09   : > { %v1771_v21 = vadd.f32 %v1768_v19, %v1596_v7 }
 0xc0b   : > { %v1774_v22 = vsel %vm724_vm3, %v1771_v21, 0.0 }
 0xc0c   : > { %1775 = vadd.xlane.f32.xlu0 %v1774_v22 }
 0xc99   : > { %v1776_v23 = vpop.xlane.xlu0 %1775 }
 0xc9a   : > { %v1777_v24 = vmul.f32 0.03125, %v1776_v23 }
 0xc9c   : > { %v1778_v25 = vsub.f32 %v1771_v21, %v1777_v24 }
 0xc9e   : > { %v1779_v26 = vmul.f32 %v1778_v25, %v1778_v25 }
 0xca0   : > { %v1780_v27 = vsel %vm724_vm3, %v1779_v26, 0.0 }
 0xca1   : > { %1781 = vadd.xlane.f32.xlu0 %v1780_v27 }
 0xd2e   : > { %v1782_v34 = vpop.xlane.xlu0 %1781 }
 0xd2f   : > { %v1783_v35 = vmul.f32 0.03125, %v1782_v34 }
 0xd31   : > { %v1784_v36 = vadd.f32 1e-05, %v1783_v35 }
 0xd33   : > { %3603 = vrsqrt.f32 %v1784_v36 }
 0xd3d   : > { %v3604_v37 = vpop.eup %3603 }
 0xd3e   : > { %v1786_v39 = vmul.f32 %v3604_v37, %v1778_v25 }
 0xd40   : > { %v1793_v41 = vmul.f32 %v3109_v38, %v1786_v39 }
 0xd42   : > { %v4244_v42 = vadd.f32 %v3110_v40, %v1793_v41 }
 0xd44   : > { %3357 = vmatmul.mubr.msk.f32.vlgmr.msra.gmra.mrb[16].mxu0 %vm724_vm3, %v4244_v42 }
 0xd45   : > { %3361 = vmatprep.mubr.msk.f32.mxu0 %vm3766_vm0, %v3765_v0 }
 0xe17   : > { %v1883_v44 = vpop.f32.mrb[16].mxu0 }
 0xe18   : > { %v4253_v45 = vadd.f32 %v3116_v43, %v1883_v44  ;;  %v3358_v46 = vpop.f32.mrb[17].mxu0 }
 0xe1a   : > { %2055 = vrot.lane.b32.xlu0 %v4253_v45, %s3770_s16  ;;  %1888 = vrot.lane.b32.xlu1 %v4253_v45, %s3769_s1  ;;  %s4486_s1 = smov 64   ;;  %s4487_s16 = smov 48  }
 0xe1e   : > { %2224 = vrot.lane.b32.xlu0 %v4253_v45, %s3774_s28  ;;  %2053 = vrot.lane.b32.xlu1 %v4253_v45, %s3771_s11  ;;  %s4488_s11 = smov 40  }
 0xe22   : > { %2395 = vrot.lane.b32.xlu0 %v4253_v45, %s3775_s19  ;;  %2226 = vrot.lane.b32.xlu1 %v4253_v45, %s3772_s13  ;;  %s4489_s13 = smov 8  }
 0xe26   : > { %2397 = vrot.lane.b32.xlu1 %v4253_v45, %s3773_s18 }
 0xe8c   : > { %v2056_v47 = vpop.permute.xlu0 %2055  ;;  %v1889_v48 = vpop.permute.xlu1 %1888 }
 0xe8d   : > { %3360 = vmatpush3.xpose.msk.msra.mxu0 %vm801_vm4, %v1889_v48  ;;  %3370 = vmatpush3.xpose.msk.msra.mxu1 %vm801_vm4, %v2056_v47 }
 0xe8e   : > { %3379 = vmatprep.subr.mxu1 %v3765_v0  ;;  %3364 = vmatprep.subr.mxu0 %v3765_v0 }
 0xe90   : > { %3362 = vmatmul.mubr.msk.f32.vlgmr.msra.gmra.mrb[18].mxu0 %vm801_vm4, %v4253_v45  ;;  %v2054_v49 = vpop.permute.xlu1 %2053  ;;  %v2225_v50 = vpop.permute.xlu0 %2224 }
 0xe91   : > { %3372 = vmatmul.mubr.msk.f32.vlgmr.msra.gmra.mrb[10].mxu1 %vm801_vm4, %v2054_v49  ;;  %3366 = vmatprep.mubr.msk.f32.mxu0 %vm3766_vm0, %v3765_v0  ;;  %v3130_v49 = vld [vmem:[%s4438_s6 + $0x20] sm:$0xff] }
 0xe92   : > { %3381 = vmatprep.mubr.msk.f32.mxu1 %vm3766_vm0, %v3765_v0 }
 0xe94   : > { %v2227_v15 = vpop.permute.xlu1 %2226  ;;  %v2396_v52 = vpop.permute.xlu0 %2395 }
 0xe95   : > { %3380 = vmatpush3.xpose.msk.msra.mxu1 %vm801_vm4, %v2227_v15  ;;  %v3131_v15 = vld [vmem:[%s4438_s6 + $0x28] sm:$0xff] }
 0xe96   : > { %3389 = vmatprep.subr.mxu1 %v3765_v0 }
 0xe98   : > { %3382 = vmatmul.mubr.msk.f32.vlgmr.msra.gmra.mrb[12].mxu1 %vm801_vm4, %v2225_v50  ;;  %v2398_v51 = vpop.permute.xlu1 %2397  ;;  %v3488_v50 = vpack.c.bf16 %v3131_v15, %v3130_v49 }
 0xe99   : > { %3390 = vmatpush3.xpose.msk.msra.mxu1 %vm801_vm4, %v2398_v51  ;;  %3391 = vmatprep.mubr.msk.f32.mxu1 %vm3766_vm0, %v3765_v0  ;;  %v3132_v51 = vld [vmem:[%s4438_s6 + $0x30] sm:$0xff] }
 0xe9a   : > { %3487 = vmatprep.subr.bf16.mxu1 %v3767_v1 }
 0xe9c   : > { %3392 = vmatmul.mubr.msk.f32.vlgmr.msra.gmra.mrb[14].mxu1 %vm801_vm4, %v2396_v52  ;;  %v3133_v52 = vld [vmem:[%s4438_s6 + $0x38] sm:$0xff] }
 0xe9d   : > { %3407 = vmatprep.mubr.msk.f32.mxu1 %vm3766_vm0, %v3765_v0  ;;  %3489 = vmatpush3.bf16.msra.mxu1 %v3488_v50 }
 0xe9e   : > { %3490 = vmatprep.subr.bf16.mxu1 %v3767_v1 }
 0xf63   : > { %v1960_v53 = vpop.f32.mrb[18].mxu0 }
 0xf64   : > { %v1964_v54 = vmul.f32 0.35355338, %v1960_v53  ;;  %v3363_v55 = vpop.f32.mrb[19].mxu0  ;;  %v2127_v56 = vpop.f32.mrb[10].mxu1  ;;  %v3491_v53 = vpack.c.bf16 %v3133_v52, %v3132_v51 }
 0xf65   : > { %v2131_v57 = vmul.f32 0.35355338, %v2127_v56  ;;  %v3373_v58 = vpop.f32.mrb[11].mxu1 }
 0xf66   : > { %v1965_v59 = vsel %vm801_vm4, %v1964_v54, -inf  ;;  %3492 = vmatpush3.bf16.msra.mxu1 %v3491_v53 }
 0xf67   : > { %1966 = vmax.xlane.f32.xlu1 %v1965_v59  ;;  %v2132_v60 = vsel %vm801_vm4, %v2131_v57, -inf  ;;  %3499 = vmatprep.subr.bf16.mxu1 %v3767_v1 }
 0xf68   : > { %2133 = vmax.xlane.f32.xlu0 %v2132_v60 }
 0xf6b   : > { %v2298_v61 = vpop.f32.mrb[12].mxu1 }
 0xf6c   : > { %v2302_v62 = vmul.f32 0.35355338, %v2298_v61  ;;  %v3383_v63 = vpop.f32.mrb[13].mxu1 }
 0xf6e   : > { %v2303_v2 = vsel %vm801_vm4, %v2302_v62, -inf }
 0xf6f   : > { %2304 = vmax.xlane.f32.xlu0 %v2303_v2  ;;  %v2469_v3 = vpop.f32.mrb[14].mxu1 }
 0xf70   : > { %v2473_v4 = vmul.f32 0.35355338, %v2469_v3  ;;  %v3393_v5 = vpop.f32.mrb[15].mxu1 }
 0xf72   : > { %v2474_v6 = vsel %vm801_vm4, %v2473_v4, -inf }
 0xf73   : > { %2475 = vmax.xlane.f32.xlu1 %v2474_v6 }
 0xf84   : > { %2143 = vrot.lane.b32.xlu1 %v4253_v45, %s3776_s21 }
 0xff4   : > { %v1967_v7 = vpop.xlane.xlu1 %1966 }
 0xff5   : > { %v1968_v8 = vsub.f32 %v1964_v54, %v1967_v7  ;;  %v2134_v9 = vpop.xlane.xlu0 %2133 }
 0xff6   : > { %v2135_v10 = vsub.f32 %v2131_v57, %v2134_v9 }
 0xff7   : > { %v1969_v11 = vmul.f32 1.442695, %v1968_v8 }
 0xff8   : > { %v2136_v12 = vmul.f32 1.442695, %v2135_v10 }
 0xff9   : > { %3605 = vpow2.f32 %v1969_v11  ;;  %v3141_v11 = vld [vmem:[%s4442_s10 + $0x20] sm:$0xff] }
 0xffa   : > { %3607 = vpow2.f32 %v2136_v12  ;;  %v3142_v12 = vld [vmem:[%s4442_s10 + $0x28] sm:$0xff] }
 0xffc   : > { %v2305_v23 = vpop.xlane.xlu0 %2304 }
 0xffd   : > { %v2306_v24 = vsub.f32 %v2302_v62, %v2305_v23  ;;  %v3135_v62 = vld [vmem:[%s4439_s7 + $0x1] ss:$0 sm:$0xff] }
 0xffe   : > { %v3152_v23 = vld [vmem:[%s4444_s12 + $0x60] sm:$0xff] }
 0xfff   : > { %v2307_v25 = vmul.f32 1.442695, %v2306_v24  ;;  %v3153_v24 = vld [vmem:[%s4444_s12 + $0x68] sm:$0xff] }
0x1000   : > { %v2476_v13 = vpop.xlane.xlu1 %2475 }
0x1001   : > { %v2477_v14 = vsub.f32 %v2473_v4, %v2476_v13  ;;  %v3494_v13 = vpack.c.bf16 %v3142_v12, %v3141_v11 }
0x1003   : > { %v3606_v16 = vpop.eup %3605  ;;  %v2478_v17 = vmul.f32 1.442695, %v2477_v14  ;;  %v3144_v14 = vld [vmem:[%s4442_s10 + $0x38] sm:$0xff] }
0x1004   : > { %v3608_v18 = vpop.eup %3607  ;;  %v1971_v19 = vsel %vm801_vm4, %v3606_v16, 0.0  ;;  %v2144_v28 = vpop.permute.xlu1 %2143 }
0x1005   : > { %3609 = vpow2.f32 %v2478_v17  ;;  %1972 = vadd.xlane.f32.xlu0 %v1971_v19  ;;  %v2138_v20 = vsel %vm801_vm4, %v3608_v18, 0.0  ;;  %v3148_v17 = vld [vmem:[%s4444_s12 + $0x40] sm:$0xff]  ;;  %v3150_v19 = vld [vmem:[%s4444_s12 + $0x50] sm:$0xff] }
0x1006   : > { %2139 = vadd.xlane.f32.xlu1 %v2138_v20  ;;  %3611 = vpow2.f32 %v2307_v25  ;;  %v3506_v25 = vpack.c.bf16 %v3153_v24, %v3152_v23 }
0x100f   : > { %v3610_v21 = vpop.eup %3609 }
0x1010   : > { %v2480_v22 = vsel %vm801_vm4, %v3610_v21, 0.0  ;;  %v3612_v26 = vpop.eup %3611 }
0x1011   : > { %2481 = vadd.xlane.f32.xlu1 %v2480_v22  ;;  %v2309_v27 = vsel %vm801_vm4, %v3612_v26, 0.0 }
0x101b   : > { %1976 = vrot.lane.b32.xlu0 %v4253_v45, %s4486_s1 }
0x1022   : > { %2314 = vrot.lane.b32.xlu1 %v4253_v45, %s4487_s16 }
0x103a   : > { %2310 = vadd.xlane.f32.xlu0 %v2309_v27 }
0x1050   : > { %2485 = vrot.lane.b32.xlu0 %v4253_v45, %s4488_s11  ;;  %s4492_s11 = sld [smem:[#allocation19_spill]] }
0x1056   : > { %v2894_v53 = vld [vmem:[%s4492_s11] sm:$0xff] }
0x1092   : > { %v1973_v29 = vpop.xlane.xlu0 %1972 }
0x1093   : > { %3613 = vrcp.f32 %v1973_v29  ;;  %v2140_v30 = vpop.xlane.xlu1 %2139 }
0x1094   : > { %3615 = vrcp.f32 %v2140_v30  ;;  %v3139_v30 = vld [vmem:[%s4440_s8 + $0x1] ss:$0 sm:$0xff] }
0x1096   : > { %v1977_v31 = vpop.permute.xlu0 %1976 }
0x1097   : > { %3365 = vmatpush3.msra.mxu0 %v1977_v31 }
0x1098   : > { %3374 = vmatprep.subr.mxu0 %v3765_v0 }
0x109d   : > { %v3614_v32 = vpop.eup %3613 }
0x109e   : > { %v1975_v33 = vmul.f32 %v3614_v32, %v3606_v16  ;;  %v2482_v34 = vpop.xlane.xlu1 %2481  ;;  %v3616_v35 = vpop.eup %3615  ;;  %v3140_v32 = vld [vmem:[%s4441_s9 + $0x1] ss:$0 sm:$0xff] }
0x109f   : > { %v2142_v36 = vmul.f32 %v3616_v35, %v3608_v18  ;;  %v3149_v18 = vld [vmem:[%s4444_s12 + $0x48] sm:$0xff]  ;;  %v3154_v35 = vld [vmem:[%s4444_s12 + $0x70] sm:$0xff] }
0x10a0   : > { %3367 = vmatmul.mubr.msk.f32.vlgmr.msra.gmra.mrb[20].mxu0 %vm801_vm4, %v1975_v33  ;;  %v3500_v20 = vpack.c.bf16 %v3149_v18, %v3148_v17 }
0x10a1   : > { %3375 = vmatpush3.msra.mxu0 %v2144_v28  ;;  %3376 = vmatprep.mubr.msk.f32.mxu0 %vm3766_vm0, %v3765_v0 }
0x10a2   : > { %v2315_v37 = vpop.permute.xlu1 %2314  ;;  %3384 = vmatprep.subr.mxu0 %v3765_v0 }
0x10a4   : > { %3377 = vmatmul.mubr.msk.f32.vlgmr.msra.gmra.mrb[22].mxu0 %vm801_vm4, %v2142_v36  ;;  %v3155_v36 = vld [vmem:[%s4444_s12 + $0x78] sm:$0xff] }
0x10a5   : > { %3385 = vmatpush3.msra.mxu0 %v2315_v37  ;;  %3386 = vmatprep.mubr.msk.f32.mxu0 %vm3766_vm0, %v3765_v0  ;;  %v3509_v37 = vpack.c.bf16 %v3155_v36, %v3154_v35 }
0x10a6   : > { %3394 = vmatprep.subr.mxu0 %v3765_v0 }
0x10c7   : > { %v2311_v38 = vpop.xlane.xlu0 %2310 }
0x10c8   : > { %3617 = vrcp.f32 %v2311_v38  ;;  %v3146_v38 = vld [vmem:[%s4484_s24 + $0x1] ss:$0 sm:$0xff] }
0x10c9   : > { %3619 = vrcp.f32 %v2482_v34 }
0x10cb   : > { %v2486_v43 = vpop.permute.xlu0 %2485 }
0x10d2   : > { %v3618_v39 = vpop.eup %3617 }
0x10d3   : > { %v2313_v40 = vmul.f32 %v3618_v39, %v3612_v26  ;;  %v3620_v41 = vpop.eup %3619 }
0x10d4   : > { %v2484_v44 = vmul.f32 %v3620_v41, %v3610_v21  ;;  %v3151_v21 = vld [vmem:[%s4444_s12 + $0x58] sm:$0xff] }
0x10d5   : > { %3387 = vmatmul.mubr.msk.f32.vlgmr.msra.gmra.mrb[24].mxu0 %vm801_vm4, %v2313_v40  ;;  %v3503_v22 = vpack.c.bf16 %v3151_v21, %v3150_v19 }
0x10d6   : > { %3395 = vmatpush3.msra.mxu0 %v2486_v43  ;;  %3396 = vmatprep.mubr.msk.f32.mxu0 %vm3766_vm0, %v3765_v0 }
0x10d7   : > { %3493 = vmatprep.subr.bf16.mxu0 %v3767_v1 }
0x10d9   : > { %3397 = vmatmul.mubr.msk.f32.vlgmr.msra.gmra.mrb[26].mxu0 %vm801_vm4, %v2484_v44 }
0x10da   : > { %3418 = vmatprep.mubr.msk.f32.mxu0 %vm3766_vm0, %v3765_v0  ;;  %3495 = vmatpush3.bf16.msra.mxu0 %v3494_v13 }
0x10db   : > { %3496 = vmatprep.subr.bf16.mxu0 %v3767_v1 }
0x1173   : > { %v2048_v45 = vpop.f32.mrb[20].mxu0 }
0x1174   : > { %2052 = vst.msk [vmem:[#allocation2] sm:$0xff] %vm801_vm4, %v2048_v45  ;;  %v3368_v46 = vpop.f32.mrb[21].mxu0 }
0x1177   : > { %v2215_v47 = vpop.f32.mrb[22].mxu0 }
0x1178   : > { %2220 = vrot.lane.b32.xlu1 %v2215_v47, %s4489_s13  ;;  %v3378_v48 = vpop.f32.mrb[23].mxu0 }
0x11a8   : > { %v2386_v54 = vpop.f32.mrb[24].mxu0 }
0x11a9   : > { %2391 = vrot.lane.b32.xlu0 %v2386_v54, %s4490_s2  ;;  %v3388_v55 = vpop.f32.mrb[25].mxu0  ;;  %v2895_v54 = vld [vmem:[%s4492_s11 + $0x8] sm:$0xff]  ;;  %s623_s2 = scalar_lea.vmem %s4493_s25, %s4496_s30 }
0x11aa   : > { %v3512_v55 = vpack.c.bf16 %v2895_v54, %v2894_v53 }
0x11ac   : > { %v2557_v56 = vpop.f32.mrb[26].mxu0 }
0x11ad   : > { %2562 = vrot.lane.b32.xlu1 %v2557_v56, %s4491_s26  ;;  %v3398_v57 = vpop.f32.mrb[27].mxu0  ;;  %v2896_v56 = vld [vmem:[%s4492_s11 + $0x10] sm:$0xff] }
0x11ae   : > { %v2897_v57 = vld [vmem:[%s4492_s11 + $0x18] sm:$0xff] }
0x11ea   : > { %v2221_v58 = vpop.permute.xlu1 %2220 }
0x11eb   : > { %2223 = vst.msk [vmem:[#allocation2] sm:$0xff] %vm1135_vm5, %v2221_v58  ;;  %v3515_v58 = vpack.c.bf16 %v2897_v57, %v2896_v56 }
0x121b   : > { %v2392_v59 = vpop.permute.xlu0 %2391 }
0x121c   : > { %2394 = vst.msk [vmem:[#allocation2] sm:$0xff] %vm1307_vm6, %v2392_v59 }
0x121f   : > { %v2563_v60 = vpop.permute.xlu1 %2562 }
0x1220   : > { %2565 = vst.msk [vmem:[#allocation2] sm:$0xff] %vm1479_vm7, %v2563_v60 }
0x1227   : > { %v2566_v61 = vld [vmem:[#allocation2] sm:$0xff] }
0x1228   : > { %3408 = vmatmul.mubr.msk.f32.vlgmr.msra.gmra.mrb[16].mxu1 %vm724_vm3, %v2566_v61 }
0x1229   : > { %3437 = vmatprep.mubr.msk.f32.mxu1 %vm3766_vm0, %v3765_v0  ;;  %3501 = vmatpush3.bf16.msra.mxu1 %v3500_v20 }
0x122a   : > { %3502 = vmatprep.subr.bf16.mxu1 %v3767_v1 }
0x122d   : > { %3504 = vmatpush3.bf16.msra.mxu1 %v3503_v22 }
0x122e   : > { %3505 = vmatprep.subr.bf16.mxu1 %v3767_v1 }
0x1231   : > { %3507 = vmatpush3.bf16.msra.mxu1 %v3506_v25 }
0x1232   : > { %3508 = vmatprep.subr.bf16.mxu1 %v3767_v1 }
0x1235   : > { %3510 = vmatpush3.bf16.msra.mxu1 %v3509_v37 }
0x12fb   : > { %v2649_v63 = vpop.f32.mrb[16].mxu1 }
0x12fc   : > { %v2650_v2 = vadd.f32 %v3135_v62, %v2649_v63  ;;  %v3409_v3 = vpop.f32.mrb[17].mxu1  ;;  %v3159_v63 = vld [vmem:[#allocation5 + $0x1] ss:$0 sm:$0xff] }
0x12fd   : > { %v3160_v3 = vld [vmem:[#allocation7 + $0x1] ss:$0 sm:$0xff] }
0x12fe   : > { %v2653_v4 = vadd.f32 %v2650_v2, %v4244_v42  ;;  %v3143_v42 = vld [vmem:[%s4442_s10 + $0x30] sm:$0xff] }
0x12ff   : > { %v3497_v16 = vpack.c.bf16 %v3144_v14, %v3143_v42 }
0x1300   : > { %v2658_v5 = vsel %vm724_vm3, %v2653_v4, 0.0 }
0x1301   : > { %2659 = vadd.xlane.f32.xlu0 %v2658_v5  ;;  %3498 = vmatpush3.bf16.msra.mxu0 %v3497_v16 }
0x1302   : > { %3511 = vmatprep.subr.bf16.mxu0 %v3767_v1 }
0x138e   : > { %v2660_v6 = vpop.xlane.xlu0 %2659 }
0x138f   : > { %v2661_v7 = vmul.f32 0.03125, %v2660_v6 }
0x1391   : > { %v2662_v8 = vsub.f32 %v2653_v4, %v2661_v7  ;;  %v2898_v7 = vld [vmem:[#allocation8] sm:$0x1] }
0x1393   : > { %v2663_v9 = vmul.f32 %v2662_v8, %v2662_v8 }
0x1395   : > { %v2664_v10 = vsel %vm724_vm3, %v2663_v9, 0.0 }
0x1396   : > { %2665 = vadd.xlane.f32.xlu1 %v2664_v10  ;;  %v2973_v10 = vlaneseq }
0x1398   : > { %v2974_v12 = vand.u32 127, %v2973_v10 }
0x139a   : > { %vm2975_vm9 = vcmp.ge.s32.totalorder %v2974_v12, 6  ;;  %vm2976_vm10 = vcmp.lt.s32.totalorder %v2974_v12, 12 }
0x139b   : > { %vm2977_vm11 = vmand %vm2975_vm9, %vm2976_vm10 }
0x1423   : > { %v2666_v26 = vpop.xlane.xlu1 %2665 }
0x1424   : > { %v2667_v27 = vmul.f32 0.03125, %v2666_v26 }
0x1426   : > { %v2668_v28 = vadd.f32 1e-05, %v2667_v27 }
0x1428   : > { %3621 = vrsqrt.f32 %v2668_v28 }
0x1432   : > { %v3622_v29 = vpop.eup %3621 }
0x1433   : > { %v2670_v31 = vmul.f32 %v3622_v29, %v2662_v8 }
0x1435   : > { %v2677_v33 = vmul.f32 %v3139_v30, %v2670_v31 }
0x1437   : > { %v2684_v34 = vadd.f32 %v3140_v32, %v2677_v33 }
0x1439   : > { %3419 = vmatmul.mubr.msk.f32.vlgmr.msra.gmra.mrb[28].mxu0 %vm724_vm3, %v2684_v34 }
0x143a   : > { %3448 = vmatprep.mubr.msk.f32.mxu0 %vm3766_vm0, %v3765_v0  ;;  %v3157_v0 = vld [vmem:[%s4485_s29 + $0x1] ss:$0 sm:$0xff]  ;;  %3513 = vmatpush3.bf16.msra.mxu0 %v3512_v55 }
0x143b   : > { %3514 = vmatprep.subr.bf16.mxu0 %v3767_v1 }
0x143e   : > { %3516 = vmatpush3.bf16.msra.mxu0 %v3515_v58 }
0x150c   : > { %v2767_v39 = vpop.f32.mrb[28].mxu0 }
0x150d   : > { %v2768_v40 = vadd.f32 %v3146_v38, %v2767_v39  ;;  %v3420_v41 = vpop.f32.mrb[29].mxu0 }
0x150f   : > { %v2771_v43 = vmax.f32 %v2768_v40, 0.0 }
0x1511   : > { %3438 = vmatmul.mubr.msk.f32.vlgmr.msra.gmra.mrb[18].mxu1 %vm1697_vm8, %v2771_v43 }
0x15e4   : > { %v2858_v44 = vpop.f32.mrb[18].mxu1 }
0x15e5   : > { %v2859_v45 = vadd.f32 %v3157_v0, %v2858_v44  ;;  %v3439_v46 = vpop.f32.mrb[19].mxu1 }
0x15e7   : > { %v2862_v47 = vadd.f32 %v2859_v45, %v2684_v34 }
0x15e9   : > { %v2867_v48 = vsel %vm724_vm3, %v2862_v47, 0.0 }
0x15ea   : > { %2868 = vadd.xlane.f32.xlu0 %v2867_v48 }
0x1677   : > { %v2869_v49 = vpop.xlane.xlu0 %2868 }
0x1678   : > { %v2870_v15 = vmul.f32 0.03125, %v2869_v49 }
0x167a   : > { %v2871_v50 = vsub.f32 %v2862_v47, %v2870_v15 }
0x167c   : > { %v2872_v51 = vmul.f32 %v2871_v50, %v2871_v50 }
0x167e   : > { %v2873_v52 = vsel %vm724_vm3, %v2872_v51, 0.0 }
0x167f   : > { %2874 = vadd.xlane.f32.xlu0 %v2873_v52 }
0x170c   : > { %v2875_v59 = vpop.xlane.xlu0 %2874 }
0x170d   : > { %v2876_v60 = vmul.f32 0.03125, %v2875_v59 }
0x170f   : > { %v2877_v61 = vadd.f32 1e-05, %v2876_v60 }
0x1711   : > { %3623 = vrsqrt.f32 %v2877_v61 }
0x171b   : > { %v3624_v62 = vpop.eup %3623 }
0x171c   : > { %v2879_v2 = vmul.f32 %v3624_v62, %v2871_v50 }
0x171e   : > { %v2886_v4 = vmul.f32 %v3159_v63, %v2879_v2 }
0x1720   : > { %v2893_v5 = vadd.f32 %v3160_v3, %v2886_v4 }
0x1722   : > { %v2900_v6 = vrot.slane %v2893_v5, 7 }
0x1724   : > { %3449 = vmatmul.mubr.msk.f32.vlgmr.msra.gmra.mrb[30].mxu0 %vm724_vm3, %v2900_v6 }
0x17f7   : > { %v2969_v8 = vpop.f32.mrb[30].mxu0 }
0x17f8   : > { %v2970_v9 = vadd.f32 %v2969_v8, %v2898_v7  ;;  %v3450_v1 = vpop.f32.mrb[31].mxu0 }
0x17fa   : > { %v2978_v11 = vmul.f32 1.442695, %v2970_v9 }
0x17fc   : > { %3625 = vpow2.f32 %v2978_v11 }
0x1806   : > { %v3626_v13 = vpop.eup %3625 }
0x1807   : > { %v2980_v42 = vsel %vm2977_vm11, %v3626_v13, %v2970_v9 }
0x1808   : > { %2981 = vst [vmem:[%s623_s2] sm:$0x1] %v2980_v42 }
0x1809 PF: > { %s4494_s26 = sld [smem:[#allocation13_spill]] }
0x180f   : > { %s31_s27 = sadd.s32 1, %s4494_s26  }
0x1810   : > { %p28_p6 = scmp.ge.s32.totalorder %s31_s27, 4  }
0x1812   :  { %30 = sbr.rel (!%p28_p6) target bundleno = 11 (0xb), region = 151 }
0x1819   :  { %2999 = vsyncpa [#allocation4], 1 }
0x181a   :  { %3001 = vsyncpa [#allocation4 + $0x1], 1 }
0x181b   :  { %3002 = vsyncpa [#allocation6], 1 }
0x181c   :  { %3003 = vsyncpa [#allocation9], 1 }

</bundles_post_ra>
